<compile_context>
chip_gen: v7x
topology: tpu7x:2x2x1
jax: 0.10.0
libtpu: 0.0.40
codegen_flags: <defaults>
</compile_context>

<pallas_src>
import functools

import numpy as np
import jax
import jax.numpy as jnp
from jax.experimental import pallas as pl
from jax.experimental.pallas import tpu as pltpu


def _largest_divisor(n, candidates):
    for t in candidates:
        if t <= n and n % t == 0:
            return t
    # TODO(synk): N with no nice divisor falls back to a single block
    # (no padding/masking path).
    return n


# ----------------------------------------------------------------------------
# Conv3d (kernel 3, padding 1): 27 taps folded into K -> one matmul per tile,
# fused bias + LeakyReLU.  Weights/bias stay resident in VMEM.
# ----------------------------------------------------------------------------
def _conv3d_kernel(x_ref, w_ref, b_ref, o_ref, *, apply_lrelu, slope):
    acc = jnp.dot(x_ref[...], w_ref[...], preferred_element_type=jnp.float32)
    out = acc + b_ref[...]
    if apply_lrelu:
        out = jnp.where(out >= 0.0, out, slope * out)
    o_ref[...] = out.astype(o_ref.dtype)


def _im2col(x):
    # (B, D, H, W, C) -> (B*D*H*W, 27*C): zero-padded shifted views, taps in K.
    B, D, H, W, C = x.shape
    xp = jnp.pad(x, ((0, 0), (1, 1), (1, 1), (1, 1), (0, 0)))
    cols = []
    for kd in range(3):
        for kh in range(3):
            for kw in range(3):
                cols.append(xp[:, kd:kd + D, kh:kh + H, kw:kw + W, :]
                            .reshape(B * D * H * W, C))
    return jnp.concatenate(cols, axis=-1)


def conv3d_pallas(x, w, b, *, lrelu, compute_dtype=jnp.float32):
    # x: (B, D, H, W, Cin); w: (Cout, Cin, 3, 3, 3) torch layout; b: (Cout,)
    B, D, H, W, Cin = x.shape
    Cout = w.shape[0]
    N = B * D * H * W
    K = 27 * Cin
    xs = _im2col(x).astype(compute_dtype)                           # (N, 27*Cin)
    ws = (jnp.transpose(w, (2, 3, 4, 1, 0))
          .reshape(K, Cout).astype(compute_dtype))                  # (27*Cin, Cout)
    bias = b.reshape(1, Cout).astype(jnp.float32)

    tn = _largest_divisor(N, (4096, 2048, 1024, 512, 256, 128, 64, 32, 16, 8))
    grid = (N // tn,)

    out = pl.pallas_call(
        functools.partial(_conv3d_kernel, apply_lrelu=lrelu, slope=0.2),
        out_shape=jax.ShapeDtypeStruct((N, Cout), jnp.float32),
        grid_spec=pltpu.PrefetchScalarGridSpec(
            num_scalar_prefetch=0,
            grid=grid,
            in_specs=[
                pl.BlockSpec((tn, K), lambda i: (i, 0)),
                pl.BlockSpec((K, Cout), lambda i: (0, 0)),   # resident weights
                pl.BlockSpec((1, Cout), lambda i: (0, 0)),   # resident bias
            ],
            out_specs=pl.BlockSpec((tn, Cout), lambda i: (i, 0)),
        ),
        compiler_params=pltpu.CompilerParams(
            dimension_semantics=("parallel",)),
    )(xs, ws, bias)
    return out.reshape(B, D, H, W, Cout)


# ----------------------------------------------------------------------------
# VecInt: scaling & squaring with in-kernel trilinear grid_sample
# (align_corners=True, zeros padding), lane-dense (3, N) layout + real gathers.
# ----------------------------------------------------------------------------
def _vecint_kernel(flow_ref, o_ref, *, D, H, W, nsteps, scale):
    N = D * H * W
    HW = H * W
    lin = jax.lax.broadcasted_iota(jnp.int32, (1, N), 1)
    d_idx = (lin // HW).astype(jnp.float32)
    h_idx = ((lin // W) % H).astype(jnp.float32)
    w_idx = (lin % W).astype(jnp.float32)

    # Output block is resident across the kernel: use it as the working state.
    o_ref[...] = flow_ref[...] * scale                      # (3, N)

    for _ in range(nsteps):
        v = o_ref[...]                                      # (3, N)
        # channel 0 -> x/W displacement, 1 -> y/H, 2 -> z/D (voxelmorph order)
        px = w_idx + v[0:1, :]
        py = h_idx + v[1:2, :]
        pz = d_idx + v[2:3, :]
        x0f, y0f, z0f = jnp.floor(px), jnp.floor(py), jnp.floor(pz)
        x0 = x0f.astype(jnp.int32)
        y0 = y0f.astype(jnp.int32)
        z0 = z0f.astype(jnp.int32)
        wx1, wy1, wz1 = px - x0f, py - y0f, pz - z0f
        wx0, wy0, wz0 = 1.0 - wx1, 1.0 - wy1, 1.0 - wz1

        acc = jnp.zeros((3, N), jnp.float32)
        for cz in (0, 1):
            for cy in (0, 1):
                for cx in (0, 1):
                    ix, iy, iz = x0 + cx, y0 + cy, z0 + cz
                    wgt = ((wx1 if cx else wx0) *
                           (wy1 if cy else wy0) *
                           (wz1 if cz else wz0))
                    valid = ((ix >= 0) & (ix < W) & (iy >= 0) & (iy < H) &
                             (iz >= 0) & (iz < D))
                    wgt = jnp.where(valid, wgt, 0.0)        # zeros padding
                    flat = jnp.clip(iz * HW + iy * W + ix, 0, N - 1)  # (1, N)
                    g = jnp.take_along_axis(
                        v, jnp.broadcast_to(flat, (3, N)), axis=1)
                    acc = acc + wgt * g
        o_ref[...] = v + acc


def vecint_pallas(flow_ncdhw, *, nsteps):
    # flow: (G, 3, Dd, Hd, Wd); G may already stack pos/neg fields.
    G, C, Dd, Hd, Wd = flow_ncdhw.shape
    N = Dd * Hd * Wd
    scale = 1.0 / (2 ** nsteps)
    flow2 = flow_ncdhw.reshape(G, C, N)
    out = pl.pallas_call(
        functools.partial(_vecint_kernel, D=Dd, H=Hd, W=Wd,
                          nsteps=nsteps, scale=scale),
        out_shape=jax.ShapeDtypeStruct((G, C, N), jnp.float32),
        grid_spec=pltpu.PrefetchScalarGridSpec(
            num_scalar_prefetch=0,
            grid=(G,),
            in_specs=[pl.BlockSpec((None, C, N), lambda g: (g, 0, 0))],
            out_specs=pl.BlockSpec((None, C, N), lambda g: (g, 0, 0)),
        ),
        compiler_params=pltpu.CompilerParams(
            dimension_semantics=("parallel",)),
    )(flow2)
    return out.reshape(G, C, Dd, Hd, Wd)


# ----------------------------------------------------------------------------
# ResizeTransform: separable trilinear interpolation (align_corners=True) in
# NCDHW layout -> three tiled matmul pallas_calls, no per-batch loop, no
# transposes.  The scalar factor is folded into the D-axis matrix.
# ----------------------------------------------------------------------------
def _matmul_kernel(a_ref, b_ref, o_ref):
    o_ref[...] = jnp.dot(a_ref[...], b_ref[...],
                         preferred_element_type=jnp.float32).astype(o_ref.dtype)


def _resize_axis_mid(x3, M):
    # x3: (G, K, Nc), M: (O, K) -> (G, O, Nc);  out[g] = M @ x3[g]
    G, K, Nc = x3.shape
    O = M.shape[0]
    tc = _largest_divisor(Nc, (2048, 1024, 512, 384, 256, 128))
    grid = (G, Nc // tc)
    return pl.pallas_call(
        _matmul_kernel,
        out_shape=jax.ShapeDtypeStruct((G, O, Nc), jnp.float32),
        grid_spec=pltpu.PrefetchScalarGridSpec(
            num_scalar_prefetch=0,
            grid=grid,
            in_specs=[pl.BlockSpec((O, K), lambda g, j: (0, 0)),
                      pl.BlockSpec((None, K, tc), lambda g, j: (g, 0, j))],
            out_specs=pl.BlockSpec((None, O, tc), lambda g, j: (g, 0, j)),
        ),
        compiler_params=pltpu.CompilerParams(
            dimension_semantics=("parallel", "parallel")),
    )(M, x3)


def _resize_axis_last(x2, MT):
    # x2: (R, K), MT: (K, O) -> (R, O)
    R, K = x2.shape
    O = MT.shape[1]
    tr = _largest_divisor(R, (1024, 512, 256, 128, 64, 32, 16, 8))
    grid = (R // tr,)
    return pl.pallas_call(
        _matmul_kernel,
        out_shape=jax.ShapeDtypeStruct((R, O), jnp.float32),
        grid_spec=pltpu.PrefetchScalarGridSpec(
            num_scalar_prefetch=0,
            grid=grid,
            in_specs=[pl.BlockSpec((tr, K), lambda i: (i, 0)),
                      pl.BlockSpec((K, O), lambda i: (0, 0))],
            out_specs=pl.BlockSpec((tr, O), lambda i: (i, 0)),
        ),
        compiler_params=pltpu.CompilerParams(
            dimension_semantics=("parallel",)),
    )(x2, MT)


def resize_volume_ncdhw(x, Md, Mh, Mw):
    # x: (B, C, D, H, W) -> (B, C, Do, Ho, Wo); matrices include any scaling.
    B, C, D, H, W = x.shape
    Do, Ho, Wo = Md.shape[0], Mh.shape[0], Mw.shape[0]
    v = _resize_axis_mid(x.reshape(B * C, D, H * W), Md)         # (BC, Do, HW)
    v = _resize_axis_mid(v.reshape(B * C * Do, H, W), Mh)        # (BCDo, Ho, W)
    v = _resize_axis_last(v.reshape(B * C * Do * Ho, W), Mw.T)   # (BCDoHo, Wo)
    return v.reshape(B, C, Do, Ho, Wo)


def _interp_matrix(in_size, out_size):
    # 1-D linear interpolation matrix, align_corners=True semantics.
    M = np.zeros((out_size, in_size), dtype=np.float32)
    if out_size == 1:
        M[0, 0] = 1.0
        return M
    for o in range(out_size):
        src = o * (in_size - 1) / (out_size - 1)
        i0 = min(max(int(np.floor(src)), 0), in_size - 1)
        i1 = min(i0 + 1, in_size - 1)
        w = src - i0
        M[o, i0] += 1.0 - w
        M[o, i1] += w
    return M


# ----------------------------------------------------------------------------
# VoxDecoder forward
# ----------------------------------------------------------------------------
def vox_decoder_forward(inp_ncdhw, params, cfg):
    # inp_ncdhw: (B, C, D, H, W) as in PyTorch.
    x = jnp.transpose(inp_ncdhw, (0, 2, 3, 4, 1))                # NDHWC

    # TODO(synk): the `Decoder` class source was not provided; implemented as a
    # voxelmorph-style stack of Conv3d(k=3, pad=1) + LeakyReLU(0.2) blocks.
    for (w, b) in params['decoder']:
        x = conv3d_pallas(x, w, b, lrelu=True, compute_dtype=jnp.bfloat16)

    # Flow head kept in f32 (Normal(0, 1e-5) weights).
    flow = conv3d_pallas(x, params['flow_w'], params['flow_b'], lrelu=False,
                         compute_dtype=jnp.float32)              # (B,D,H,W,3)
    pos_flow = jnp.transpose(flow, (0, 4, 1, 2, 3))              # NCDHW

    # ResizeTransform (factor = 1/int_downsize < 1): interp then scale
    # (scalar folded into Md_down).
    pos_flow = resize_volume_ncdhw(pos_flow, cfg['Md_down'], cfg['Mh_down'],
                                   cfg['Mw_down'])
    preint_flow = pos_flow

    # VecInt: pos and neg integrated in one fused call (grid = 2B, parallel).
    B = pos_flow.shape[0]
    stacked = jnp.concatenate([pos_flow, -pos_flow], axis=0)     # (2B,3,...)
    integrated = vecint_pallas(stacked, nsteps=cfg['int_steps'])

    # fullsize ResizeTransform (factor = int_downsize > 1): scale then interp
    # (scalar folded into Md_up); pos/neg resized together.
    up = resize_volume_ncdhw(integrated, cfg['Md_up'], cfg['Mh_up'],
                             cfg['Mw_up'])
    pos_out, neg_out = up[:B], up[B:]
    return pos_out, neg_out, preint_flow


if __name__ == "__main__":
    key = jax.random.PRNGKey(0)
    B, in_ch = 2, 4
    inshape = (8, 8, 8)            # 3-D volume (D, H, W)
    int_steps, int_downsize = 7, 2
    dec_feats = [16, 8]            # stand-in decoder feature sizes; final_nf=8

    k_dec, k_flow, k_inp = jax.random.split(key, 3)

    # Deterministic synthetic parameters (torch Conv3d weight layout).
    params = {'decoder': []}
    c = in_ch
    dk = k_dec
    for f in dec_feats:
        dk, k1 = jax.random.split(dk)
        params['decoder'].append(
            (jax.random.normal(k1, (f, c, 3, 3, 3), jnp.float32) * 0.05,
             jnp.zeros((f,), jnp.float32)))
        c = f
    # flow head: Normal(0, 1e-5) weights, zero bias (as in the module).
    params['flow_w'] = jax.random.normal(
        k_flow, (3, c, 3, 3, 3), jnp.float32) * 1e-5
    params['flow_b'] = jnp.zeros((3,), jnp.float32)

    D, H, W = inshape
    Dd, Hd, Wd = (d // int_downsize for d in inshape)
    f_down = np.float32(1.0 / int_downsize)
    f_up = np.float32(int_downsize)
    cfg = dict(
        int_steps=int_steps,
        Md_down=jnp.asarray(f_down * _interp_matrix(D, Dd), dtype=jnp.float32),
        Mh_down=jnp.asarray(_interp_matrix(H, Hd), dtype=jnp.float32),
        Mw_down=jnp.asarray(_interp_matrix(W, Wd), dtype=jnp.float32),
        Md_up=jnp.asarray(f_up * _interp_matrix(Dd, D), dtype=jnp.float32),
        Mh_up=jnp.asarray(_interp_matrix(Hd, H), dtype=jnp.float32),
        Mw_up=jnp.asarray(_interp_matrix(Wd, W), dtype=jnp.float32),
    )

    inp = jax.random.normal(k_inp, (B, in_ch, D, H, W), jnp.float32)  # NCDHW
    pos_flow, neg_flow, preint_flow = vox_decoder_forward(inp, params, cfg)
    jax.block_until_ready((pos_flow, neg_flow, preint_flow))

    assert pos_flow.shape == (B, 3, D, H, W)
    assert neg_flow.shape == (B, 3, D, H, W)
    assert preint_flow.shape == (B, 3, Dd, Hd, Wd)
    assert bool(jnp.all(jnp.isfinite(pos_flow)))
    assert bool(jnp.all(jnp.isfinite(neg_flow)))
    print("KERNEL_OK")
</pallas_src>

<mosaic_0001>
module attributes {stable_mosaic.version = 11 : i64} {
  func.func @_conv3d_kernel(%arg0: i32, %arg1: memref<1024x108xbf16, #tpu.memory_space<vmem>>, %arg2: memref<108x16xbf16, #tpu.memory_space<vmem>>, %arg3: memref<1x16xf32, #tpu.memory_space<vmem>>, %arg4: memref<1024x16xf32, #tpu.memory_space<vmem>>) attributes {dimension_semantics = [#tpu.dimension_semantics<parallel>], iteration_bounds = array<i64: 1>, scalar_prefetch = 0 : i64, scratch_operands = 0 : i64, tpu.core_type = #tpu.core_type<tc>, window_params = [{transform_indices = @transform_0, window_bounds = array<i64: 1024, 108>}, {pipeline_mode = #tpu.pipeline_mode<synchronous>, transform_indices = @transform_1, window_bounds = array<i64: 108, 16>}, {pipeline_mode = #tpu.pipeline_mode<synchronous>, transform_indices = @transform_2, window_bounds = array<i64: 1, 16>}, {transform_indices = @transform_3, window_bounds = array<i64: 1024, 16>}]} {
    %c0 = arith.constant 0 : index
    %c0_0 = arith.constant 0 : index
    %0 = vector.load %arg1[%c0, %c0_0] : memref<1024x108xbf16, #tpu.memory_space<vmem>>, vector<1024x108xbf16>
    %c0_1 = arith.constant 0 : index
    %c0_2 = arith.constant 0 : index
    %1 = vector.load %arg2[%c0_1, %c0_2] : memref<108x16xbf16, #tpu.memory_space<vmem>>, vector<108x16xbf16>
    %cst = arith.constant dense<0.000000e+00> : vector<1024x16xf32>
    %2 = tpu.matmul %0, %1, %cst {dimension_numbers = #tpu.dot_dimension_numbers<[1], [0], [0], [1], [0, 0, 1, 1], [], []>} : vector<1024x108xbf16>, vector<108x16xbf16>, vector<1024x16xf32> -> vector<1024x16xf32>
    %c0_3 = arith.constant 0 : index
    %c0_4 = arith.constant 0 : index
    %3 = vector.load %arg3[%c0_3, %c0_4] : memref<1x16xf32, #tpu.memory_space<vmem>>, vector<1x16xf32>
    %4 = vector.broadcast %3 : vector<1x16xf32> to vector<1024x16xf32>
    %5 = arith.addf %2, %4 : vector<1024x16xf32>
    %cst_5 = arith.constant 0.000000e+00 : f32
    %6 = vector.broadcast %cst_5 : f32 to vector<1024x16xf32>
    %7 = arith.cmpf oge, %5, %6 : vector<1024x16xf32>
    %cst_6 = arith.constant 2.000000e-01 : f32
    %8 = vector.broadcast %cst_6 : f32 to vector<1024x16xf32>
    %9 = arith.mulf %8, %5 : vector<1024x16xf32>
    %10 = arith.select %7, %5, %9 : vector<1024x16xi1>, vector<1024x16xf32>
    %c0_7 = arith.constant 0 : index
    %c0_8 = arith.constant 0 : index
    %11 = vector.load %arg4[%c0_7, %c0_8] : memref<1024x16xf32, #tpu.memory_space<vmem>>, vector<1024x16xf32>
    tpu.vector_store %arg4[%c0_7, %c0_8], %10 {strides = array<i32>} : memref<1024x16xf32, #tpu.memory_space<vmem>>, vector<1024x16xf32>,
    return
  }
  func.func @transform_0(%arg0: i32) -> (i32, i32) {
    %c0_i32 = arith.constant 0 : i32
    %c0_i32_0 = arith.constant 0 : i32
    return %arg0, %c0_i32 : i32, i32
  }
  func.func @transform_1(%arg0: i32) -> (i32, i32) {
    %c0_i32 = arith.constant 0 : i32
    %c0_i32_0 = arith.constant 0 : i32
    %c0_i32_1 = arith.constant 0 : i32
    return %c0_i32, %c0_i32_0 : i32, i32
  }
  func.func @transform_2(%arg0: i32) -> (i32, i32) {
    %c0_i32 = arith.constant 0 : i32
    %c0_i32_0 = arith.constant 0 : i32
    %c0_i32_1 = arith.constant 0 : i32
    return %c0_i32, %c0_i32_0 : i32, i32
  }
  func.func @transform_3(%arg0: i32) -> (i32, i32) {
    %c0_i32 = arith.constant 0 : i32
    %c0_i32_0 = arith.constant 0 : i32
    return %arg0, %c0_i32 : i32, i32
  }
}

</mosaic_0001>

<bundles_post_ra>
// kernel: tpu_custom_call.1
= control target key start
LH: loop header
LB: loop body
LE: loop exit
PB: predicated region body
PF: predicated region fallthrough
CT: control target
= control target key end

     0   :  { %vm525_vm0 = vcmask 883712   ;;  %vm718_vm1 = vcmask 1045504   ;;  %vm1651_vm2 = vcmask 130048   ;;  %s3168_s1 = inlined_call_operand.vmem [shape: bf16[108,16], index: 1, kind: input, shape index: {}]   ;;  %s3169_s0 = inlined_call_operand.vmem [shape: bf16[1024,108], index: 0, kind: input, shape index: {}]   ;;  %s3170_s2 = inlined_call_operand.vmem [shape: f32[1,16], index: 2, kind: input, shape index: {}]   ;;  %s3171_s3 = inlined_call_operand.vmem [shape: f32[1024,16], index: 3, kind: output, shape index: {}]  }
   0x1   :  { %v2149_v0 = vld [vmem:[%s3168_s1] sm:$0xff]   ;;  %v2150_v1 = vld [vmem:[%s3168_s1 + $0x8] sm:$0xff]   ;;  %v2151_v2 = vld [vmem:[%s3168_s1 + $0x10] sm:$0xff]  }
   0x2   :  { %1991 = vmatprep.subr.bf16.mxu0 %v2149_v0  ;;  %2133 = vmatprep.subr.bf16.mxu1 %v2149_v0  ;;  %v2152_v3 = vld [vmem:[%s3168_s1 + $0x18] sm:$0xff]   ;;  %v2156_v4 = vld [vmem:[%s3169_s0] sm:$0xff]   ;;  %v2154_v7 = vld [vmem:[%s3168_s1 + $0x28] sm:$0xff]  }
   0x3   :  { %1992 = vmatpush3.bf16.msra.mxu0 %v2149_v0  ;;  %2140 = vmatpush3.bf16.msra.mxu1 %v2149_v0  ;;  %v2157_v5 = vld [vmem:[%s3169_s0 + $0x100] sm:$0xff]   ;;  %v2155_v8 = vld [vmem:[%s3168_s1 + $0x30] sm:$0x3f]   ;;  %v2158_v10 = vld [vmem:[%s3169_s0 + $0x8] sm:$0xff]  }
   0x4   :  { %1993 = vmatprep.subr.bf16.mxu0 %v2150_v1  ;;  %2134 = vmatprep.subr.bf16.mxu1 %v2150_v1  ;;  %v2153_v6 = vld [vmem:[%s3168_s1 + $0x20] sm:$0xff]   ;;  %v720_v9 = vsel %vm718_vm1, %v2155_v8, 0  ;;  %v2159_v11 = vld [vmem:[%s3169_s0 + $0x108] sm:$0xff]   ;;  %v2160_v12 = vld [vmem:[%s3169_s0 + $0x10] sm:$0xff]  }
   0x5   :  { %2005 = vmatprep.mubr.msk.bf16.mxu0 %vm525_vm0, %v2156_v4  ;;  %2069 = vmatprep.mubr.msk.bf16.mxu1 %vm525_vm0, %v2157_v5  ;;  %v2161_v13 = vld [vmem:[%s3169_s0 + $0x110] sm:$0xff]   ;;  %v2162_v14 = vld [vmem:[%s3169_s0 + $0x18] sm:$0xff]   ;;  %v2164_v16 = vld [vmem:[%s3169_s0 + $0x20] sm:$0xff]  }
   0x6   :  { %v2163_v15 = vld [vmem:[%s3169_s0 + $0x118] sm:$0xff]   ;;  %v2165_v17 = vld [vmem:[%s3169_s0 + $0x120] sm:$0xff]   ;;  %v2166_v18 = vld [vmem:[%s3169_s0 + $0x28] sm:$0xff]  }
   0x7   :  { %1994 = vmatpush3.bf16.msra.mxu0 %v2150_v1  ;;  %2141 = vmatpush3.bf16.msra.mxu1 %v2150_v1  ;;  %v2167_v19 = vld [vmem:[%s3169_s0 + $0x128] sm:$0xff]   ;;  %v2168_v20 = vld [vmem:[%s3169_s0 + $0x30] sm:$0xff]   ;;  %v2170_v22 = vld [vmem:[%s3169_s0 + $0x38] sm:$0xff]  }
   0x8   :  { %1995 = vmatprep.subr.bf16.mxu0 %v2151_v2  ;;  %2135 = vmatprep.subr.bf16.mxu1 %v2151_v2  ;;  %v2169_v21 = vld [vmem:[%s3169_s0 + $0x130] sm:$0xff]   ;;  %v2171_v23 = vld [vmem:[%s3169_s0 + $0x138] sm:$0xff]   ;;  %v2172_v24 = vld [vmem:[%s3169_s0 + $0x40] sm:$0xff]  }
   0x9   :  { %v2173_v25 = vld [vmem:[%s3169_s0 + $0x140] sm:$0xff]   ;;  %v2174_v26 = vld [vmem:[%s3169_s0 + $0x48] sm:$0xff]   ;;  %v2176_v28 = vld [vmem:[%s3169_s0 + $0x50] sm:$0xff]  }
   0xa   :  { %v2175_v27 = vld [vmem:[%s3169_s0 + $0x148] sm:$0xff]   ;;  %v2177_v29 = vld [vmem:[%s3169_s0 + $0x150] sm:$0xff]   ;;  %v2178_v30 = vld [vmem:[%s3169_s0 + $0x58] sm:$0xff]  }
   0xb   :  { %1996 = vmatpush3.bf16.msra.mxu0 %v2151_v2  ;;  %2142 = vmatpush3.bf16.msra.mxu1 %v2151_v2  ;;  %v2179_v31 = vld [vmem:[%s3169_s0 + $0x158] sm:$0xff]   ;;  %v2180_v32 = vld [vmem:[%s3169_s0 + $0x60] sm:$0xff]   ;;  %v2182_v34 = vld [vmem:[%s3169_s0 + $0x68] sm:$0xff]  }
   0xc   :  { %1997 = vmatprep.subr.bf16.mxu0 %v2152_v3  ;;  %2136 = vmatprep.subr.bf16.mxu1 %v2152_v3  ;;  %v2181_v33 = vld [vmem:[%s3169_s0 + $0x160] sm:$0xff]   ;;  %v2183_v35 = vld [vmem:[%s3169_s0 + $0x168] sm:$0xff]   ;;  %v2184_v36 = vld [vmem:[%s3169_s0 + $0x70] sm:$0xff]  }
   0xd   :  { %v2185_v37 = vld [vmem:[%s3169_s0 + $0x170] sm:$0xff]   ;;  %v2186_v38 = vld [vmem:[%s3169_s0 + $0x78] sm:$0xff]   ;;  %v2188_v40 = vld [vmem:[%s3169_s0 + $0x80] sm:$0xff]  }
   0xe   :  { %v2187_v39 = vld [vmem:[%s3169_s0 + $0x178] sm:$0xff]   ;;  %v2189_v41 = vld [vmem:[%s3169_s0 + $0x180] sm:$0xff]   ;;  %v2190_v42 = vld [vmem:[%s3169_s0 + $0x88] sm:$0xff]  }
   0xf   :  { %1998 = vmatpush3.bf16.msra.mxu0 %v2152_v3  ;;  %2143 = vmatpush3.bf16.msra.mxu1 %v2152_v3  ;;  %v2191_v43 = vld [vmem:[%s3169_s0 + $0x188] sm:$0xff]   ;;  %v2192_v44 = vld [vmem:[%s3169_s0 + $0x90] sm:$0xff]   ;;  %v2194_v46 = vld [vmem:[%s3169_s0 + $0x98] sm:$0xff]  }
  0x10   :  { %1999 = vmatprep.subr.bf16.mxu0 %v2153_v6  ;;  %2137 = vmatprep.subr.bf16.mxu1 %v2153_v6  ;;  %v2193_v45 = vld [vmem:[%s3169_s0 + $0x190] sm:$0xff]   ;;  %v2195_v47 = vld [vmem:[%s3169_s0 + $0x198] sm:$0xff]   ;;  %v2196_v48 = vld [vmem:[%s3169_s0 + $0xa0] sm:$0xff]  }
  0x11   :  { %v2197_v49 = vld [vmem:[%s3169_s0 + $0x1a0] sm:$0xff]   ;;  %v2198_v50 = vld [vmem:[%s3169_s0 + $0xa8] sm:$0xff]   ;;  %v2200_v52 = vld [vmem:[%s3169_s0 + $0xb0] sm:$0xff]  }
  0x12   :  { %v2199_v51 = vld [vmem:[%s3169_s0 + $0x1a8] sm:$0xff]   ;;  %v2201_v53 = vld [vmem:[%s3169_s0 + $0x1b0] sm:$0xff]   ;;  %v2202_v54 = vld [vmem:[%s3169_s0 + $0xb8] sm:$0xff]  }
  0x13   :  { %2000 = vmatpush3.bf16.msra.mxu0 %v2153_v6  ;;  %2144 = vmatpush3.bf16.msra.mxu1 %v2153_v6  ;;  %v2203_v55 = vld [vmem:[%s3169_s0 + $0x1b8] sm:$0xff]   ;;  %v2204_v56 = vld [vmem:[%s3169_s0 + $0xc0] sm:$0xff]   ;;  %v2206_v58 = vld [vmem:[%s3169_s0 + $0xc8] sm:$0xff]  }
  0x14   :  { %2001 = vmatprep.subr.bf16.mxu0 %v2154_v7  ;;  %2138 = vmatprep.subr.bf16.mxu1 %v2154_v7  ;;  %v2205_v57 = vld [vmem:[%s3169_s0 + $0x1c0] sm:$0xff]   ;;  %v2207_v59 = vld [vmem:[%s3169_s0 + $0x1c8] sm:$0xff]   ;;  %v2208_v60 = vld [vmem:[%s3169_s0 + $0xd0] sm:$0xff]  }
  0x15   :  { %v2209_v61 = vld [vmem:[%s3169_s0 + $0x1d0] sm:$0xff]   ;;  %v2210_v62 = vld [vmem:[%s3169_s0 + $0xd8] sm:$0xff]   ;;  %v2212_v0 = vld [vmem:[%s3169_s0 + $0xe0] sm:$0xff]  }
  0x16   :  { %v2211_v63 = vld [vmem:[%s3169_s0 + $0x1d8] sm:$0xff]   ;;  %v2213_v1 = vld [vmem:[%s3169_s0 + $0x1e0] sm:$0xff]   ;;  %v2214_v2 = vld [vmem:[%s3169_s0 + $0xe8] sm:$0xff]  }
  0x17   :  { %2002 = vmatpush3.bf16.msra.mxu0 %v2154_v7  ;;  %2145 = vmatpush3.bf16.msra.mxu1 %v2154_v7  ;;  %v2215_v3 = vld [vmem:[%s3169_s0 + $0x1e8] sm:$0xff]   ;;  %v2216_v4 = vld [vmem:[%s3169_s0 + $0xf0] sm:$0xff]   ;;  %v2218_v6 = vld [vmem:[%s3169_s0 + $0xf8] sm:$0xff]  }
  0x18   :  { %2147 = vmatprep.subr.msk.bf16.mxu0 %vm718_vm1, %v2155_v8  ;;  %2148 = vmatprep.subr.msk.bf16.mxu1 %vm718_vm1, %v2155_v8  ;;  %v2217_v5 = vld [vmem:[%s3169_s0 + $0x1f0] sm:$0xff]   ;;  %v2219_v7 = vld [vmem:[%s3169_s0 + $0x1f8] sm:$0xff]   ;;  %v2521_v8 = vld [vmem:[%s3170_s2] ss:$0 sm:$0xff] }
  0x1b   :  { %2004 = vmatpush3.bf16.msra.mxu0 %v720_v9  ;;  %2146 = vmatpush3.bf16.msra.mxu1 %v720_v9 }
  0x1e   :  { %2006 = vmatmul.mubr.msk.bf16.vlgmr.msra.gmra.mrb[0].mxu0 %vm525_vm0, %v2158_v10  ;;  %2070 = vmatmul.mubr.msk.bf16.vlgmr.msra.gmra.mrb[0].mxu1 %vm525_vm0, %v2159_v11 }
  0x1f   :  { %2009 = vmatprep.mubr.msk.bf16.mxu0 %vm525_vm0, %v2160_v12  ;;  %2073 = vmatprep.mubr.msk.bf16.mxu1 %vm525_vm0, %v2161_v13 }
  0x26   :  { %2010 = vmatmul.mubr.msk.bf16.gmra.mrb[4].mxu0 %vm525_vm0, %v2162_v14  ;;  %2074 = vmatmul.mubr.msk.bf16.gmra.mrb[4].mxu1 %vm525_vm0, %v2163_v15 }
  0x27   :  { %2013 = vmatprep.mubr.msk.bf16.mxu0 %vm525_vm0, %v2164_v16  ;;  %2077 = vmatprep.mubr.msk.bf16.mxu1 %vm525_vm0, %v2165_v17 }
  0x2e   :  { %2014 = vmatmul.mubr.msk.bf16.gmra.mrb[8].mxu0 %vm525_vm0, %v2166_v18  ;;  %2078 = vmatmul.mubr.msk.bf16.gmra.mrb[8].mxu1 %vm525_vm0, %v2167_v19 }
  0x2f   :  { %2017 = vmatprep.mubr.msk.bf16.mxu0 %vm525_vm0, %v2168_v20  ;;  %2081 = vmatprep.mubr.msk.bf16.mxu1 %vm525_vm0, %v2169_v21 }
  0x36   :  { %2018 = vmatmul.mubr.msk.bf16.gmra.mrb[12].mxu0 %vm525_vm0, %v2170_v22  ;;  %2082 = vmatmul.mubr.msk.bf16.gmra.mrb[12].mxu1 %vm525_vm0, %v2171_v23 }
  0x37   :  { %2021 = vmatprep.mubr.msk.bf16.mxu0 %vm525_vm0, %v2172_v24  ;;  %2085 = vmatprep.mubr.msk.bf16.mxu1 %vm525_vm0, %v2173_v25 }
  0x3e   :  { %2022 = vmatmul.mubr.msk.bf16.gmra.mrb[16].mxu0 %vm525_vm0, %v2174_v26  ;;  %2086 = vmatmul.mubr.msk.bf16.gmra.mrb[16].mxu1 %vm525_vm0, %v2175_v27 }
  0x3f   :  { %2025 = vmatprep.mubr.msk.bf16.mxu0 %vm525_vm0, %v2176_v28  ;;  %2089 = vmatprep.mubr.msk.bf16.mxu1 %vm525_vm0, %v2177_v29 }
  0x46   :  { %2026 = vmatmul.mubr.msk.bf16.gmra.mrb[20].mxu0 %vm525_vm0, %v2178_v30  ;;  %2090 = vmatmul.mubr.msk.bf16.gmra.mrb[20].mxu1 %vm525_vm0, %v2179_v31 }
  0x47   :  { %2029 = vmatprep.mubr.msk.bf16.mxu0 %vm525_vm0, %v2180_v32  ;;  %2093 = vmatprep.mubr.msk.bf16.mxu1 %vm525_vm0, %v2181_v33 }
  0x4e   :  { %2030 = vmatmul.mubr.msk.bf16.gmra.mrb[24].mxu0 %vm525_vm0, %v2182_v34  ;;  %2094 = vmatmul.mubr.msk.bf16.gmra.mrb[24].mxu1 %vm525_vm0, %v2183_v35 }
  0x4f   :  { %2033 = vmatprep.mubr.msk.bf16.mxu0 %vm525_vm0, %v2184_v36  ;;  %2097 = vmatprep.mubr.msk.bf16.mxu1 %vm525_vm0, %v2185_v37 }
  0x56   :  { %2034 = vmatmul.mubr.msk.bf16.gmra.mrb[28].mxu0 %vm525_vm0, %v2186_v38  ;;  %2098 = vmatmul.mubr.msk.bf16.gmra.mrb[28].mxu1 %vm525_vm0, %v2187_v39 }
  0x57   :  { %2037 = vmatprep.mubr.msk.bf16.mxu0 %vm525_vm0, %v2188_v40  ;;  %2101 = vmatprep.mubr.msk.bf16.mxu1 %vm525_vm0, %v2189_v41 }
  0x5e   :  { %2038 = vmatmul.mubr.msk.bf16.gmra.mrb[32].mxu0 %vm525_vm0, %v2190_v42  ;;  %2102 = vmatmul.mubr.msk.bf16.gmra.mrb[32].mxu1 %vm525_vm0, %v2191_v43 }
  0x5f   :  { %2041 = vmatprep.mubr.msk.bf16.mxu0 %vm525_vm0, %v2192_v44  ;;  %2105 = vmatprep.mubr.msk.bf16.mxu1 %vm525_vm0, %v2193_v45 }
  0x66   :  { %2042 = vmatmul.mubr.msk.bf16.gmra.mrb[36].mxu0 %vm525_vm0, %v2194_v46  ;;  %2106 = vmatmul.mubr.msk.bf16.gmra.mrb[36].mxu1 %vm525_vm0, %v2195_v47 }
  0x67   :  { %2045 = vmatprep.mubr.msk.bf16.mxu0 %vm525_vm0, %v2196_v48  ;;  %2109 = vmatprep.mubr.msk.bf16.mxu1 %vm525_vm0, %v2197_v49 }
  0x6e   :  { %2046 = vmatmul.mubr.msk.bf16.gmra.mrb[40].mxu0 %vm525_vm0, %v2198_v50  ;;  %2110 = vmatmul.mubr.msk.bf16.gmra.mrb[40].mxu1 %vm525_vm0, %v2199_v51 }
  0x6f   :  { %2049 = vmatprep.mubr.msk.bf16.mxu0 %vm525_vm0, %v2200_v52  ;;  %2113 = vmatprep.mubr.msk.bf16.mxu1 %vm525_vm0, %v2201_v53 }
  0x76   :  { %2050 = vmatmul.mubr.msk.bf16.gmra.mrb[44].mxu0 %vm525_vm0, %v2202_v54  ;;  %2114 = vmatmul.mubr.msk.bf16.gmra.mrb[44].mxu1 %vm525_vm0, %v2203_v55 }
  0x77   :  { %2053 = vmatprep.mubr.msk.bf16.mxu0 %vm525_vm0, %v2204_v56  ;;  %2117 = vmatprep.mubr.msk.bf16.mxu1 %vm525_vm0, %v2205_v57 }
  0x7e   :  { %2054 = vmatmul.mubr.msk.bf16.gmra.mrb[48].mxu0 %vm525_vm0, %v2206_v58  ;;  %2118 = vmatmul.mubr.msk.bf16.gmra.mrb[48].mxu1 %vm525_vm0, %v2207_v59 }
  0x7f   :  { %2057 = vmatprep.mubr.msk.bf16.mxu0 %vm525_vm0, %v2208_v60  ;;  %2121 = vmatprep.mubr.msk.bf16.mxu1 %vm525_vm0, %v2209_v61 }
  0x86   :  { %2058 = vmatmul.mubr.msk.bf16.gmra.mrb[52].mxu0 %vm525_vm0, %v2210_v62  ;;  %2122 = vmatmul.mubr.msk.bf16.gmra.mrb[52].mxu1 %vm525_vm0, %v2211_v63 }
  0x87   :  { %2061 = vmatprep.mubr.msk.bf16.mxu0 %vm525_vm0, %v2212_v0  ;;  %2125 = vmatprep.mubr.msk.bf16.mxu1 %vm525_vm0, %v2213_v1 }
  0x8e   :  { %2062 = vmatmul.mubr.msk.bf16.gmra.mrb[56].mxu0 %vm525_vm0, %v2214_v2  ;;  %2126 = vmatmul.mubr.msk.bf16.gmra.mrb[56].mxu1 %vm525_vm0, %v2215_v3 }
  0x8f   :  { %2065 = vmatprep.mubr.msk.bf16.mxu0 %vm525_vm0, %v2216_v4  ;;  %2129 = vmatprep.mubr.msk.bf16.mxu1 %vm525_vm0, %v2217_v5 }
  0x96   :  { %2066 = vmatmul.mubr.msk.bf16.gmra.mrb[60].mxu0 %vm525_vm0, %v2218_v6  ;;  %2130 = vmatmul.mubr.msk.bf16.gmra.mrb[60].mxu1 %vm525_vm0, %v2219_v7 }
  0xf1   :  { %v2007_v9 = vpop.f32.mrb[0].mxu0  ;;  %v2071_v10 = vpop.f32.mrb[0].mxu1 }
  0xf2   :  { %v765_v11 = vadd.f32 %v2007_v9, %v2521_v8  ;;  %v1021_v12 = vadd.f32 %v2071_v10, %v2521_v8  ;;  %v756_v13 = vpop.f32.mrb[1].mxu0  ;;  %v1012_v14 = vpop.f32.mrb[1].mxu1 }
  0xf3   :  { %v757_v15 = vadd.f32 %v2521_v8, %v756_v13  ;;  %v1013_v16 = vadd.f32 %v2521_v8, %v1012_v14  ;;  %v2008_v17 = vpop.f32.mrb[2].mxu0  ;;  %v2072_v18 = vpop.f32.mrb[2].mxu1 }
  0xf4   :  { %vm1269_vm3 = vcmp.ge.f32.partialorder %v765_v11, 0.0  ;;  %v1397_v19 = vmul.f32 0.2, %v765_v11  ;;  %vm1333_vm4 = vcmp.ge.f32.partialorder %v1021_v12, 0.0  ;;  %v1461_v20 = vmul.f32 0.2, %v1021_v12 }
  0xf5   :  { %vm1267_vm5 = vcmp.ge.f32.partialorder %v757_v15, 0.0  ;;  %v1395_v21 = vmul.f32 0.2, %v757_v15  ;;  %vm1331_vm6 = vcmp.ge.f32.partialorder %v1013_v16, 0.0  ;;  %v1459_v22 = vmul.f32 0.2, %v1013_v16 }
  0xf6   :  { %v1525_v23 = vsel %vm1269_vm3, %v765_v11, %v1397_v19  ;;  %v1589_v24 = vsel %vm1333_vm4, %v1021_v12, %v1461_v20  ;;  %v768_v25 = vadd.f32 %v2008_v17, %v2521_v8  ;;  %v1024_v26 = vadd.f32 %v2072_v18, %v2521_v8  ;;  %v759_v27 = vpop.f32.mrb[3].mxu0  ;;  %v1015_v28 = vpop.f32.mrb[3].mxu1 }
  0xf7   :  { %1654 = vst.msk [vmem:[%s3171_s3 + $0x10] sm:$0xff] %vm1651_vm2, %v1525_v23  ;;  %1718 = vst.msk [vmem:[%s3171_s3 + $0x210] sm:$0xff] %vm1651_vm2, %v1589_v24  ;;  %v1523_v29 = vsel %vm1267_vm5, %v757_v15, %v1395_v21  ;;  %v1587_v30 = vsel %vm1331_vm6, %v1013_v16, %v1459_v22  ;;  %v760_v31 = vadd.f32 %v2521_v8, %v759_v27 }
  0xf8   :  { %v1016_v32 = vadd.f32 %v2521_v8, %v1015_v28  ;;  %1652 = vst.msk [vmem:[%s3171_s3] sm:$0xff] %vm1651_vm2, %v1523_v29  ;;  %1716 = vst.msk [vmem:[%s3171_s3 + $0x200] sm:$0xff] %vm1651_vm2, %v1587_v30  ;;  %vm1270_vm7 = vcmp.ge.f32.partialorder %v768_v25, 0.0  ;;  %v1398_v33 = vmul.f32 0.2, %v768_v25  ;;  %vm1334_vm8 = vcmp.ge.f32.partialorder %v1024_v26, 0.0 }
  0xf9   :  { %v1462_v34 = vmul.f32 0.2, %v1024_v26  ;;  %vm1268_vm9 = vcmp.ge.f32.partialorder %v760_v31, 0.0  ;;  %v1396_v35 = vmul.f32 0.2, %v760_v31  ;;  %v2011_v39 = vpop.f32.mrb[4].mxu0 }
  0xfa   :  { %vm1332_vm10 = vcmp.ge.f32.partialorder %v1016_v32, 0.0  ;;  %v1460_v36 = vmul.f32 0.2, %v1016_v32  ;;  %v1526_v37 = vsel %vm1270_vm7, %v768_v25, %v1398_v33  ;;  %v2075_v40 = vpop.f32.mrb[4].mxu1  ;;  %v781_v43 = vadd.f32 %v2011_v39, %v2521_v8  ;;  %v772_v45 = vpop.f32.mrb[5].mxu0 }
  0xfb   :  { %v1590_v38 = vsel %vm1334_vm8, %v1024_v26, %v1462_v34  ;;  %1655 = vst.msk [vmem:[%s3171_s3 + $0x18] sm:$0xff] %vm1651_vm2, %v1526_v37  ;;  %v1524_v41 = vsel %vm1268_vm9, %v760_v31, %v1396_v35  ;;  %v1037_v44 = vadd.f32 %v2075_v40, %v2521_v8  ;;  %v1028_v46 = vpop.f32.mrb[5].mxu1  ;;  %v773_v47 = vadd.f32 %v2521_v8, %v772_v45  ;;  %v2012_v49 = vpop.f32.mrb[6].mxu0 }
  0xfc   :  { %1719 = vst.msk [vmem:[%s3171_s3 + $0x218] sm:$0xff] %vm1651_vm2, %v1590_v38  ;;  %v1588_v42 = vsel %vm1332_vm10, %v1016_v32, %v1460_v36  ;;  %1653 = vst.msk [vmem:[%s3171_s3 + $0x8] sm:$0xff] %vm1651_vm2, %v1524_v41  ;;  %v1029_v48 = vadd.f32 %v2521_v8, %v1028_v46  ;;  %v2076_v50 = vpop.f32.mrb[6].mxu1  ;;  %vm1273_vm11 = vcmp.ge.f32.partialorder %v781_v43, 0.0  ;;  %v1401_v51 = vmul.f32 0.2, %v781_v43 }
  0xfd   :  { %1717 = vst.msk [vmem:[%s3171_s3 + $0x208] sm:$0xff] %vm1651_vm2, %v1588_v42  ;;  %vm1337_vm12 = vcmp.ge.f32.partialorder %v1037_v44, 0.0  ;;  %v1465_v52 = vmul.f32 0.2, %v1037_v44  ;;  %vm1271_vm13 = vcmp.ge.f32.partialorder %v773_v47, 0.0  ;;  %v784_v57 = vadd.f32 %v2012_v49, %v2521_v8  ;;  %v775_v59 = vpop.f32.mrb[7].mxu0 }
  0xfe   :  { %v1399_v53 = vmul.f32 0.2, %v773_v47  ;;  %vm1335_vm14 = vcmp.ge.f32.partialorder %v1029_v48, 0.0  ;;  %v1463_v54 = vmul.f32 0.2, %v1029_v48  ;;  %v1529_v55 = vsel %vm1273_vm11, %v781_v43, %v1401_v51  ;;  %v1031_v60 = vpop.f32.mrb[7].mxu1 }
  0xff   :  { %v1593_v56 = vsel %vm1337_vm12, %v1037_v44, %v1465_v52  ;;  %v1040_v58 = vadd.f32 %v2076_v50, %v2521_v8  ;;  %1658 = vst.msk [vmem:[%s3171_s3 + $0x30] sm:$0xff] %vm1651_vm2, %v1529_v55  ;;  %v776_v63 = vadd.f32 %v2521_v8, %v775_v59  ;;  %v1032_v0 = vadd.f32 %v2521_v8, %v1031_v60 }
 0x100   :  { %1722 = vst.msk [vmem:[%s3171_s3 + $0x230] sm:$0xff] %vm1651_vm2, %v1593_v56  ;;  %v1527_v61 = vsel %vm1271_vm13, %v773_v47, %v1399_v53  ;;  %v1591_v62 = vsel %vm1335_vm14, %v1029_v48, %v1463_v54  ;;  %vm1274_vm15 = vcmp.ge.f32.partialorder %v784_v57, 0.0  ;;  %v1402_v1 = vmul.f32 0.2, %v784_v57 }
 0x101   :  { %1656 = vst.msk [vmem:[%s3171_s3 + $0x20] sm:$0xff] %vm1651_vm2, %v1527_v61  ;;  %1720 = vst.msk [vmem:[%s3171_s3 + $0x220] sm:$0xff] %vm1651_vm2, %v1591_v62  ;;  %vm1338_vm0 = vcmp.ge.f32.partialorder %v1040_v58, 0.0  ;;  %v1466_v2 = vmul.f32 0.2, %v1040_v58  ;;  %vm1272_vm1 = vcmp.ge.f32.partialorder %v776_v63, 0.0 }
 0x102   :  { %v1400_v3 = vmul.f32 0.2, %v776_v63  ;;  %vm1336_vm3 = vcmp.ge.f32.partialorder %v1032_v0, 0.0  ;;  %v1464_v4 = vmul.f32 0.2, %v1032_v0  ;;  %v1530_v5 = vsel %vm1274_vm15, %v784_v57, %v1402_v1  ;;  %v2015_v7 = vpop.f32.mrb[8].mxu0 }
 0x103   :  { %v1594_v6 = vsel %vm1338_vm0, %v1040_v58, %v1466_v2  ;;  %v2079_v9 = vpop.f32.mrb[8].mxu1  ;;  %1659 = vst.msk [vmem:[%s3171_s3 + $0x38] sm:$0xff] %vm1651_vm2, %v1530_v5  ;;  %v797_v12 = vadd.f32 %v2015_v7, %v2521_v8  ;;  %v788_v14 = vpop.f32.mrb[9].mxu0 }
 0x104   :  { %1723 = vst.msk [vmem:[%s3171_s3 + $0x238] sm:$0xff] %vm1651_vm2, %v1594_v6  ;;  %v1528_v10 = vsel %vm1272_vm1, %v776_v63, %v1400_v3  ;;  %v1592_v11 = vsel %vm1336_vm3, %v1032_v0, %v1464_v4  ;;  %v1053_v13 = vadd.f32 %v2079_v9, %v2521_v8  ;;  %v1044_v15 = vpop.f32.mrb[9].mxu1  ;;  %v789_v16 = vadd.f32 %v2521_v8, %v788_v14  ;;  %v2016_v18 = vpop.f32.mrb[10].mxu0 }
 0x105   :  { %1657 = vst.msk [vmem:[%s3171_s3 + $0x28] sm:$0xff] %vm1651_vm2, %v1528_v10  ;;  %1721 = vst.msk [vmem:[%s3171_s3 + $0x228] sm:$0xff] %vm1651_vm2, %v1592_v11  ;;  %v1045_v17 = vadd.f32 %v2521_v8, %v1044_v15  ;;  %v2080_v19 = vpop.f32.mrb[10].mxu1  ;;  %vm1277_vm4 = vcmp.ge.f32.partialorder %v797_v12, 0.0  ;;  %v1405_v20 = vmul.f32 0.2, %v797_v12  ;;  %v800_v26 = vadd.f32 %v2016_v18, %v2521_v8 }
 0x106   :  { %vm1341_vm5 = vcmp.ge.f32.partialorder %v1053_v13, 0.0  ;;  %v1469_v21 = vmul.f32 0.2, %v1053_v13  ;;  %vm1275_vm6 = vcmp.ge.f32.partialorder %v789_v16, 0.0  ;;  %v1403_v22 = vmul.f32 0.2, %v789_v16 }
 0x107   :  { %vm1339_vm7 = vcmp.ge.f32.partialorder %v1045_v17, 0.0  ;;  %v1467_v23 = vmul.f32 0.2, %v1045_v17  ;;  %v1533_v24 = vsel %vm1277_vm4, %v797_v12, %v1405_v20  ;;  %v1056_v27 = vadd.f32 %v2080_v19, %v2521_v8  ;;  %v791_v28 = vpop.f32.mrb[11].mxu0  ;;  %v1047_v29 = vpop.f32.mrb[11].mxu1 }
 0x108   :  { %v1597_v25 = vsel %vm1341_vm5, %v1053_v13, %v1469_v21  ;;  %1662 = vst.msk [vmem:[%s3171_s3 + $0x50] sm:$0xff] %vm1651_vm2, %v1533_v24  ;;  %v1531_v30 = vsel %vm1275_vm6, %v789_v16, %v1403_v22  ;;  %v792_v32 = vadd.f32 %v2521_v8, %v791_v28  ;;  %v1048_v33 = vadd.f32 %v2521_v8, %v1047_v29 }
 0x109   :  { %1726 = vst.msk [vmem:[%s3171_s3 + $0x250] sm:$0xff] %vm1651_vm2, %v1597_v25  ;;  %v1595_v31 = vsel %vm1339_vm7, %v1045_v17, %v1467_v23  ;;  %v2019_v34 = vpop.f32.mrb[12].mxu0  ;;  %v2083_v35 = vpop.f32.mrb[12].mxu1  ;;  %1660 = vst.msk [vmem:[%s3171_s3 + $0x40] sm:$0xff] %vm1651_vm2, %v1531_v30  ;;  %vm1278_vm8 = vcmp.ge.f32.partialorder %v800_v26, 0.0  ;;  %vm1342_vm9 = vcmp.ge.f32.partialorder %v1056_v27, 0.0 }
 0x10a   :  { %1724 = vst.msk [vmem:[%s3171_s3 + $0x240] sm:$0xff] %vm1651_vm2, %v1595_v31  ;;  %v1406_v36 = vmul.f32 0.2, %v800_v26  ;;  %v1470_v37 = vmul.f32 0.2, %v1056_v27  ;;  %vm1276_vm10 = vcmp.ge.f32.partialorder %v792_v32, 0.0  ;;  %v813_v42 = vadd.f32 %v2019_v34, %v2521_v8 }
 0x10b   :  { %v1404_v38 = vmul.f32 0.2, %v792_v32  ;;  %vm1340_vm11 = vcmp.ge.f32.partialorder %v1048_v33, 0.0  ;;  %v1468_v39 = vmul.f32 0.2, %v1048_v33  ;;  %v1069_v43 = vadd.f32 %v2083_v35, %v2521_v8  ;;  %v804_v44 = vpop.f32.mrb[13].mxu0 }
 0x10c   :  { %v1534_v40 = vsel %vm1278_vm8, %v800_v26, %v1406_v36  ;;  %v1598_v41 = vsel %vm1342_vm9, %v1056_v27, %v1470_v37  ;;  %v1060_v45 = vpop.f32.mrb[13].mxu1  ;;  %v805_v48 = vadd.f32 %v2521_v8, %v804_v44  ;;  %v2020_v50 = vpop.f32.mrb[14].mxu0  ;;  %vm1281_vm12 = vcmp.ge.f32.partialorder %v813_v42, 0.0 }
 0x10d   :  { %1663 = vst.msk [vmem:[%s3171_s3 + $0x58] sm:$0xff] %vm1651_vm2, %v1534_v40  ;;  %1727 = vst.msk [vmem:[%s3171_s3 + $0x258] sm:$0xff] %vm1651_vm2, %v1598_v41  ;;  %v1532_v46 = vsel %vm1276_vm10, %v792_v32, %v1404_v38  ;;  %v1596_v47 = vsel %vm1340_vm11, %v1048_v33, %v1468_v39  ;;  %v1061_v49 = vadd.f32 %v2521_v8, %v1060_v45  ;;  %v2084_v51 = vpop.f32.mrb[14].mxu1  ;;  %v1409_v52 = vmul.f32 0.2, %v813_v42  ;;  %v807_v60 = vpop.f32.mrb[15].mxu0 }
 0x10e   :  { %1661 = vst.msk [vmem:[%s3171_s3 + $0x48] sm:$0xff] %vm1651_vm2, %v1532_v46  ;;  %1725 = vst.msk [vmem:[%s3171_s3 + $0x248] sm:$0xff] %vm1651_vm2, %v1596_v47  ;;  %vm1345_vm13 = vcmp.ge.f32.partialorder %v1069_v43, 0.0  ;;  %v1473_v53 = vmul.f32 0.2, %v1069_v43  ;;  %vm1279_vm14 = vcmp.ge.f32.partialorder %v805_v48, 0.0  ;;  %v816_v58 = vadd.f32 %v2020_v50, %v2521_v8 }
 0x10f   :  { %v1407_v54 = vmul.f32 0.2, %v805_v48  ;;  %vm1343_vm15 = vcmp.ge.f32.partialorder %v1061_v49, 0.0  ;;  %v1471_v55 = vmul.f32 0.2, %v1061_v49  ;;  %v1537_v56 = vsel %vm1281_vm12, %v813_v42, %v1409_v52  ;;  %v1063_v61 = vpop.f32.mrb[15].mxu1 }
 0x110   :  { %v1601_v57 = vsel %vm1345_vm13, %v1069_v43, %v1473_v53  ;;  %v1072_v59 = vadd.f32 %v2084_v51, %v2521_v8  ;;  %1666 = vst.msk [vmem:[%s3171_s3 + $0x70] sm:$0xff] %vm1651_vm2, %v1537_v56  ;;  %v808_v0 = vadd.f32 %v2521_v8, %v807_v60  ;;  %v1064_v1 = vadd.f32 %v2521_v8, %v1063_v61 }
 0x111   :  { %1730 = vst.msk [vmem:[%s3171_s3 + $0x270] sm:$0xff] %vm1651_vm2, %v1601_v57  ;;  %v1535_v62 = vsel %vm1279_vm14, %v805_v48, %v1407_v54  ;;  %v1599_v63 = vsel %vm1343_vm15, %v1061_v49, %v1471_v55  ;;  %v2023_v2 = vpop.f32.mrb[16].mxu0  ;;  %v2087_v3 = vpop.f32.mrb[16].mxu1  ;;  %vm1282_vm0 = vcmp.ge.f32.partialorder %v816_v58, 0.0  ;;  %v1410_v4 = vmul.f32 0.2, %v816_v58 }
 0x112   :  { %1664 = vst.msk [vmem:[%s3171_s3 + $0x60] sm:$0xff] %vm1651_vm2, %v1535_v62  ;;  %1728 = vst.msk [vmem:[%s3171_s3 + $0x260] sm:$0xff] %vm1651_vm2, %v1599_v63  ;;  %vm1346_vm1 = vcmp.ge.f32.partialorder %v1072_v59, 0.0  ;;  %v1474_v5 = vmul.f32 0.2, %v1072_v59  ;;  %vm1280_vm3 = vcmp.ge.f32.partialorder %v808_v0, 0.0  ;;  %v829_v11 = vadd.f32 %v2023_v2, %v2521_v8 }
 0x113   :  { %v1408_v6 = vmul.f32 0.2, %v808_v0  ;;  %vm1344_vm4 = vcmp.ge.f32.partialorder %v1064_v1, 0.0  ;;  %v1472_v7 = vmul.f32 0.2, %v1064_v1  ;;  %v1538_v9 = vsel %vm1282_vm0, %v816_v58, %v1410_v4  ;;  %v820_v13 = vpop.f32.mrb[17].mxu0 }
 0x114   :  { %v1602_v10 = vsel %vm1346_vm1, %v1072_v59, %v1474_v5  ;;  %v1085_v12 = vadd.f32 %v2087_v3, %v2521_v8  ;;  %v1076_v14 = vpop.f32.mrb[17].mxu1  ;;  %1667 = vst.msk [vmem:[%s3171_s3 + $0x78] sm:$0xff] %vm1651_vm2, %v1538_v9  ;;  %v821_v17 = vadd.f32 %v2521_v8, %v820_v13  ;;  %v2024_v19 = vpop.f32.mrb[18].mxu0  ;;  %vm1285_vm5 = vcmp.ge.f32.partialorder %v829_v11, 0.0 }
 0x115   :  { %1731 = vst.msk [vmem:[%s3171_s3 + $0x278] sm:$0xff] %vm1651_vm2, %v1602_v10  ;;  %v1536_v15 = vsel %vm1280_vm3, %v808_v0, %v1408_v6  ;;  %v1600_v16 = vsel %vm1344_vm4, %v1064_v1, %v1472_v7  ;;  %v1077_v18 = vadd.f32 %v2521_v8, %v1076_v14  ;;  %v2088_v20 = vpop.f32.mrb[18].mxu1  ;;  %v1413_v21 = vmul.f32 0.2, %v829_v11  ;;  %v823_v29 = vpop.f32.mrb[19].mxu0 }
 0x116   :  { %1665 = vst.msk [vmem:[%s3171_s3 + $0x68] sm:$0xff] %vm1651_vm2, %v1536_v15  ;;  %1729 = vst.msk [vmem:[%s3171_s3 + $0x268] sm:$0xff] %vm1651_vm2, %v1600_v16  ;;  %vm1349_vm6 = vcmp.ge.f32.partialorder %v1085_v12, 0.0  ;;  %v1477_v22 = vmul.f32 0.2, %v1085_v12  ;;  %vm1283_vm7 = vcmp.ge.f32.partialorder %v821_v17, 0.0  ;;  %v832_v27 = vadd.f32 %v2024_v19, %v2521_v8 }
 0x117   :  { %v1411_v23 = vmul.f32 0.2, %v821_v17  ;;  %vm1347_vm8 = vcmp.ge.f32.partialorder %v1077_v18, 0.0  ;;  %v1475_v24 = vmul.f32 0.2, %v1077_v18  ;;  %v1541_v25 = vsel %vm1285_vm5, %v829_v11, %v1413_v21  ;;  %v1079_v30 = vpop.f32.mrb[19].mxu1 }
 0x118   :  { %v1605_v26 = vsel %vm1349_vm6, %v1085_v12, %v1477_v22  ;;  %v1088_v28 = vadd.f32 %v2088_v20, %v2521_v8  ;;  %1670 = vst.msk [vmem:[%s3171_s3 + $0x90] sm:$0xff] %vm1651_vm2, %v1541_v25  ;;  %v824_v33 = vadd.f32 %v2521_v8, %v823_v29  ;;  %v1080_v34 = vadd.f32 %v2521_v8, %v1079_v30 }
 0x119   :  { %1734 = vst.msk [vmem:[%s3171_s3 + $0x290] sm:$0xff] %vm1651_vm2, %v1605_v26  ;;  %v1539_v31 = vsel %vm1283_vm7, %v821_v17, %v1411_v23  ;;  %v1603_v32 = vsel %vm1347_vm8, %v1077_v18, %v1475_v24  ;;  %v2027_v35 = vpop.f32.mrb[20].mxu0  ;;  %v2091_v36 = vpop.f32.mrb[20].mxu1  ;;  %vm1286_vm9 = vcmp.ge.f32.partialorder %v832_v27, 0.0  ;;  %v1414_v37 = vmul.f32 0.2, %v832_v27 }
 0x11a   :  { %1668 = vst.msk [vmem:[%s3171_s3 + $0x80] sm:$0xff] %vm1651_vm2, %v1539_v31  ;;  %1732 = vst.msk [vmem:[%s3171_s3 + $0x280] sm:$0xff] %vm1651_vm2, %v1603_v32  ;;  %vm1350_vm10 = vcmp.ge.f32.partialorder %v1088_v28, 0.0  ;;  %v1478_v38 = vmul.f32 0.2, %v1088_v28  ;;  %vm1284_vm11 = vcmp.ge.f32.partialorder %v824_v33, 0.0  ;;  %v845_v43 = vadd.f32 %v2027_v35, %v2521_v8 }
 0x11b   :  { %v1412_v39 = vmul.f32 0.2, %v824_v33  ;;  %vm1348_vm12 = vcmp.ge.f32.partialorder %v1080_v34, 0.0  ;;  %v1476_v40 = vmul.f32 0.2, %v1080_v34  ;;  %v1542_v41 = vsel %vm1286_vm9, %v832_v27, %v1414_v37  ;;  %v836_v45 = vpop.f32.mrb[21].mxu0 }
 0x11c   :  { %v1606_v42 = vsel %vm1350_vm10, %v1088_v28, %v1478_v38  ;;  %v1101_v44 = vadd.f32 %v2091_v36, %v2521_v8  ;;  %v1092_v46 = vpop.f32.mrb[21].mxu1  ;;  %1671 = vst.msk [vmem:[%s3171_s3 + $0x98] sm:$0xff] %vm1651_vm2, %v1542_v41  ;;  %v837_v49 = vadd.f32 %v2521_v8, %v836_v45  ;;  %v2028_v51 = vpop.f32.mrb[22].mxu0  ;;  %vm1289_vm13 = vcmp.ge.f32.partialorder %v845_v43, 0.0 }
 0x11d   :  { %1735 = vst.msk [vmem:[%s3171_s3 + $0x298] sm:$0xff] %vm1651_vm2, %v1606_v42  ;;  %v1540_v47 = vsel %vm1284_vm11, %v824_v33, %v1412_v39  ;;  %v1604_v48 = vsel %vm1348_vm12, %v1080_v34, %v1476_v40  ;;  %v1093_v50 = vadd.f32 %v2521_v8, %v1092_v46  ;;  %v2092_v52 = vpop.f32.mrb[22].mxu1  ;;  %v1417_v53 = vmul.f32 0.2, %v845_v43  ;;  %v839_v61 = vpop.f32.mrb[23].mxu0 }
 0x11e   :  { %1669 = vst.msk [vmem:[%s3171_s3 + $0x88] sm:$0xff] %vm1651_vm2, %v1540_v47  ;;  %1733 = vst.msk [vmem:[%s3171_s3 + $0x288] sm:$0xff] %vm1651_vm2, %v1604_v48  ;;  %vm1353_vm14 = vcmp.ge.f32.partialorder %v1101_v44, 0.0  ;;  %v1481_v54 = vmul.f32 0.2, %v1101_v44  ;;  %vm1287_vm15 = vcmp.ge.f32.partialorder %v837_v49, 0.0  ;;  %v848_v59 = vadd.f32 %v2028_v51, %v2521_v8 }
 0x11f   :  { %v1415_v55 = vmul.f32 0.2, %v837_v49  ;;  %vm1351_vm0 = vcmp.ge.f32.partialorder %v1093_v50, 0.0  ;;  %v1479_v56 = vmul.f32 0.2, %v1093_v50  ;;  %v1545_v57 = vsel %vm1289_vm13, %v845_v43, %v1417_v53  ;;  %v1095_v62 = vpop.f32.mrb[23].mxu1 }
 0x120   :  { %v1609_v58 = vsel %vm1353_vm14, %v1101_v44, %v1481_v54  ;;  %v1104_v60 = vadd.f32 %v2092_v52, %v2521_v8  ;;  %1674 = vst.msk [vmem:[%s3171_s3 + $0xb0] sm:$0xff] %vm1651_vm2, %v1545_v57  ;;  %v840_v1 = vadd.f32 %v2521_v8, %v839_v61  ;;  %v1096_v2 = vadd.f32 %v2521_v8, %v1095_v62 }
 0x121   :  { %1738 = vst.msk [vmem:[%s3171_s3 + $0x2b0] sm:$0xff] %vm1651_vm2, %v1609_v58  ;;  %v1543_v63 = vsel %vm1287_vm15, %v837_v49, %v1415_v55  ;;  %v1607_v0 = vsel %vm1351_vm0, %v1093_v50, %v1479_v56  ;;  %v2031_v3 = vpop.f32.mrb[24].mxu0  ;;  %v2095_v4 = vpop.f32.mrb[24].mxu1  ;;  %vm1290_vm1 = vcmp.ge.f32.partialorder %v848_v59, 0.0  ;;  %v1418_v5 = vmul.f32 0.2, %v848_v59 }
 0x122   :  { %1672 = vst.msk [vmem:[%s3171_s3 + $0xa0] sm:$0xff] %vm1651_vm2, %v1543_v63  ;;  %1736 = vst.msk [vmem:[%s3171_s3 + $0x2a0] sm:$0xff] %vm1651_vm2, %v1607_v0  ;;  %vm1354_vm3 = vcmp.ge.f32.partialorder %v1104_v60, 0.0  ;;  %v1482_v6 = vmul.f32 0.2, %v1104_v60  ;;  %vm1288_vm4 = vcmp.ge.f32.partialorder %v840_v1, 0.0  ;;  %v861_v12 = vadd.f32 %v2031_v3, %v2521_v8 }
 0x123   :  { %v1416_v7 = vmul.f32 0.2, %v840_v1  ;;  %vm1352_vm5 = vcmp.ge.f32.partialorder %v1096_v2, 0.0  ;;  %v1480_v9 = vmul.f32 0.2, %v1096_v2  ;;  %v1546_v10 = vsel %vm1290_vm1, %v848_v59, %v1418_v5  ;;  %v852_v14 = vpop.f32.mrb[25].mxu0 }
 0x124   :  { %v1610_v11 = vsel %vm1354_vm3, %v1104_v60, %v1482_v6  ;;  %v1117_v13 = vadd.f32 %v2095_v4, %v2521_v8  ;;  %v1108_v15 = vpop.f32.mrb[25].mxu1  ;;  %1675 = vst.msk [vmem:[%s3171_s3 + $0xb8] sm:$0xff] %vm1651_vm2, %v1546_v10  ;;  %v853_v18 = vadd.f32 %v2521_v8, %v852_v14  ;;  %v2032_v20 = vpop.f32.mrb[26].mxu0  ;;  %vm1293_vm6 = vcmp.ge.f32.partialorder %v861_v12, 0.0 }
 0x125   :  { %1739 = vst.msk [vmem:[%s3171_s3 + $0x2b8] sm:$0xff] %vm1651_vm2, %v1610_v11  ;;  %v1544_v16 = vsel %vm1288_vm4, %v840_v1, %v1416_v7  ;;  %v1608_v17 = vsel %vm1352_vm5, %v1096_v2, %v1480_v9  ;;  %v1109_v19 = vadd.f32 %v2521_v8, %v1108_v15  ;;  %v2096_v21 = vpop.f32.mrb[26].mxu1  ;;  %v1421_v22 = vmul.f32 0.2, %v861_v12  ;;  %v855_v30 = vpop.f32.mrb[27].mxu0 }
 0x126   :  { %1673 = vst.msk [vmem:[%s3171_s3 + $0xa8] sm:$0xff] %vm1651_vm2, %v1544_v16  ;;  %1737 = vst.msk [vmem:[%s3171_s3 + $0x2a8] sm:$0xff] %vm1651_vm2, %v1608_v17  ;;  %vm1357_vm7 = vcmp.ge.f32.partialorder %v1117_v13, 0.0  ;;  %v1485_v23 = vmul.f32 0.2, %v1117_v13  ;;  %vm1291_vm8 = vcmp.ge.f32.partialorder %v853_v18, 0.0  ;;  %v864_v28 = vadd.f32 %v2032_v20, %v2521_v8 }
 0x127   :  { %v1419_v24 = vmul.f32 0.2, %v853_v18  ;;  %vm1355_vm9 = vcmp.ge.f32.partialorder %v1109_v19, 0.0  ;;  %v1483_v25 = vmul.f32 0.2, %v1109_v19  ;;  %v1549_v26 = vsel %vm1293_vm6, %v861_v12, %v1421_v22  ;;  %v1111_v31 = vpop.f32.mrb[27].mxu1 }
 0x128   :  { %v1613_v27 = vsel %vm1357_vm7, %v1117_v13, %v1485_v23  ;;  %v1120_v29 = vadd.f32 %v2096_v21, %v2521_v8  ;;  %1678 = vst.msk [vmem:[%s3171_s3 + $0xd0] sm:$0xff] %vm1651_vm2, %v1549_v26  ;;  %v856_v34 = vadd.f32 %v2521_v8, %v855_v30  ;;  %v1112_v35 = vadd.f32 %v2521_v8, %v1111_v31 }
 0x129   :  { %1742 = vst.msk [vmem:[%s3171_s3 + $0x2d0] sm:$0xff] %vm1651_vm2, %v1613_v27  ;;  %v1547_v32 = vsel %vm1291_vm8, %v853_v18, %v1419_v24  ;;  %v1611_v33 = vsel %vm1355_vm9, %v1109_v19, %v1483_v25  ;;  %v2035_v36 = vpop.f32.mrb[28].mxu0  ;;  %v2099_v37 = vpop.f32.mrb[28].mxu1  ;;  %vm1294_vm10 = vcmp.ge.f32.partialorder %v864_v28, 0.0  ;;  %v1422_v38 = vmul.f32 0.2, %v864_v28 }
 0x12a   :  { %1676 = vst.msk [vmem:[%s3171_s3 + $0xc0] sm:$0xff] %vm1651_vm2, %v1547_v32  ;;  %1740 = vst.msk [vmem:[%s3171_s3 + $0x2c0] sm:$0xff] %vm1651_vm2, %v1611_v33  ;;  %vm1358_vm11 = vcmp.ge.f32.partialorder %v1120_v29, 0.0  ;;  %v1486_v39 = vmul.f32 0.2, %v1120_v29  ;;  %vm1292_vm12 = vcmp.ge.f32.partialorder %v856_v34, 0.0  ;;  %v877_v44 = vadd.f32 %v2035_v36, %v2521_v8 }
 0x12b   :  { %v1420_v40 = vmul.f32 0.2, %v856_v34  ;;  %vm1356_vm13 = vcmp.ge.f32.partialorder %v1112_v35, 0.0  ;;  %v1484_v41 = vmul.f32 0.2, %v1112_v35  ;;  %v1550_v42 = vsel %vm1294_vm10, %v864_v28, %v1422_v38  ;;  %v868_v46 = vpop.f32.mrb[29].mxu0 }
 0x12c   :  { %v1614_v43 = vsel %vm1358_vm11, %v1120_v29, %v1486_v39  ;;  %v1133_v45 = vadd.f32 %v2099_v37, %v2521_v8  ;;  %v1124_v47 = vpop.f32.mrb[29].mxu1  ;;  %1679 = vst.msk [vmem:[%s3171_s3 + $0xd8] sm:$0xff] %vm1651_vm2, %v1550_v42  ;;  %v869_v50 = vadd.f32 %v2521_v8, %v868_v46  ;;  %v2036_v52 = vpop.f32.mrb[30].mxu0  ;;  %vm1297_vm14 = vcmp.ge.f32.partialorder %v877_v44, 0.0 }
 0x12d   :  { %1743 = vst.msk [vmem:[%s3171_s3 + $0x2d8] sm:$0xff] %vm1651_vm2, %v1614_v43  ;;  %v1548_v48 = vsel %vm1292_vm12, %v856_v34, %v1420_v40  ;;  %v1612_v49 = vsel %vm1356_vm13, %v1112_v35, %v1484_v41  ;;  %v1125_v51 = vadd.f32 %v2521_v8, %v1124_v47  ;;  %v2100_v53 = vpop.f32.mrb[30].mxu1  ;;  %v1425_v54 = vmul.f32 0.2, %v877_v44  ;;  %v871_v62 = vpop.f32.mrb[31].mxu0 }
 0x12e   :  { %1677 = vst.msk [vmem:[%s3171_s3 + $0xc8] sm:$0xff] %vm1651_vm2, %v1548_v48  ;;  %1741 = vst.msk [vmem:[%s3171_s3 + $0x2c8] sm:$0xff] %vm1651_vm2, %v1612_v49  ;;  %vm1361_vm15 = vcmp.ge.f32.partialorder %v1133_v45, 0.0  ;;  %v1489_v55 = vmul.f32 0.2, %v1133_v45  ;;  %vm1295_vm0 = vcmp.ge.f32.partialorder %v869_v50, 0.0  ;;  %v880_v60 = vadd.f32 %v2036_v52, %v2521_v8 }
 0x12f   :  { %v1423_v56 = vmul.f32 0.2, %v869_v50  ;;  %vm1359_vm1 = vcmp.ge.f32.partialorder %v1125_v51, 0.0  ;;  %v1487_v57 = vmul.f32 0.2, %v1125_v51  ;;  %v1553_v58 = vsel %vm1297_vm14, %v877_v44, %v1425_v54  ;;  %v1127_v63 = vpop.f32.mrb[31].mxu1 }
 0x130   :  { %v1617_v59 = vsel %vm1361_vm15, %v1133_v45, %v1489_v55  ;;  %v1136_v61 = vadd.f32 %v2100_v53, %v2521_v8  ;;  %1682 = vst.msk [vmem:[%s3171_s3 + $0xf0] sm:$0xff] %vm1651_vm2, %v1553_v58  ;;  %v872_v2 = vadd.f32 %v2521_v8, %v871_v62  ;;  %v1128_v3 = vadd.f32 %v2521_v8, %v1127_v63 }
 0x131   :  { %1746 = vst.msk [vmem:[%s3171_s3 + $0x2f0] sm:$0xff] %vm1651_vm2, %v1617_v59  ;;  %v1551_v0 = vsel %vm1295_vm0, %v869_v50, %v1423_v56  ;;  %v1615_v1 = vsel %vm1359_vm1, %v1125_v51, %v1487_v57  ;;  %v2039_v4 = vpop.f32.mrb[32].mxu0  ;;  %v2103_v5 = vpop.f32.mrb[32].mxu1  ;;  %vm1298_vm3 = vcmp.ge.f32.partialorder %v880_v60, 0.0  ;;  %v1426_v6 = vmul.f32 0.2, %v880_v60 }
 0x132   :  { %1680 = vst.msk [vmem:[%s3171_s3 + $0xe0] sm:$0xff] %vm1651_vm2, %v1551_v0  ;;  %1744 = vst.msk [vmem:[%s3171_s3 + $0x2e0] sm:$0xff] %vm1651_vm2, %v1615_v1  ;;  %vm1362_vm4 = vcmp.ge.f32.partialorder %v1136_v61, 0.0  ;;  %v1490_v7 = vmul.f32 0.2, %v1136_v61  ;;  %vm1296_vm5 = vcmp.ge.f32.partialorder %v872_v2, 0.0  ;;  %v893_v13 = vadd.f32 %v2039_v4, %v2521_v8 }
 0x133   :  { %v1424_v9 = vmul.f32 0.2, %v872_v2  ;;  %vm1360_vm6 = vcmp.ge.f32.partialorder %v1128_v3, 0.0  ;;  %v1488_v10 = vmul.f32 0.2, %v1128_v3  ;;  %v1554_v11 = vsel %vm1298_vm3, %v880_v60, %v1426_v6  ;;  %v884_v15 = vpop.f32.mrb[33].mxu0 }
 0x134   :  { %v1618_v12 = vsel %vm1362_vm4, %v1136_v61, %v1490_v7  ;;  %v1149_v14 = vadd.f32 %v2103_v5, %v2521_v8  ;;  %v1140_v16 = vpop.f32.mrb[33].mxu1  ;;  %1683 = vst.msk [vmem:[%s3171_s3 + $0xf8] sm:$0xff] %vm1651_vm2, %v1554_v11  ;;  %v885_v19 = vadd.f32 %v2521_v8, %v884_v15  ;;  %v2040_v21 = vpop.f32.mrb[34].mxu0  ;;  %vm1301_vm7 = vcmp.ge.f32.partialorder %v893_v13, 0.0 }
 0x135   :  { %1747 = vst.msk [vmem:[%s3171_s3 + $0x2f8] sm:$0xff] %vm1651_vm2, %v1618_v12  ;;  %v1552_v17 = vsel %vm1296_vm5, %v872_v2, %v1424_v9  ;;  %v1616_v18 = vsel %vm1360_vm6, %v1128_v3, %v1488_v10  ;;  %v1141_v20 = vadd.f32 %v2521_v8, %v1140_v16  ;;  %v2104_v22 = vpop.f32.mrb[34].mxu1  ;;  %v1429_v23 = vmul.f32 0.2, %v893_v13  ;;  %v887_v31 = vpop.f32.mrb[35].mxu0 }
 0x136   :  { %1681 = vst.msk [vmem:[%s3171_s3 + $0xe8] sm:$0xff] %vm1651_vm2, %v1552_v17  ;;  %1745 = vst.msk [vmem:[%s3171_s3 + $0x2e8] sm:$0xff] %vm1651_vm2, %v1616_v18  ;;  %vm1365_vm8 = vcmp.ge.f32.partialorder %v1149_v14, 0.0  ;;  %v1493_v24 = vmul.f32 0.2, %v1149_v14  ;;  %vm1299_vm9 = vcmp.ge.f32.partialorder %v885_v19, 0.0  ;;  %v896_v29 = vadd.f32 %v2040_v21, %v2521_v8 }
 0x137   :  { %v1427_v25 = vmul.f32 0.2, %v885_v19  ;;  %vm1363_vm10 = vcmp.ge.f32.partialorder %v1141_v20, 0.0  ;;  %v1491_v26 = vmul.f32 0.2, %v1141_v20  ;;  %v1557_v27 = vsel %vm1301_vm7, %v893_v13, %v1429_v23  ;;  %v1143_v32 = vpop.f32.mrb[35].mxu1 }
 0x138   :  { %v1621_v28 = vsel %vm1365_vm8, %v1149_v14, %v1493_v24  ;;  %v1152_v30 = vadd.f32 %v2104_v22, %v2521_v8  ;;  %1686 = vst.msk [vmem:[%s3171_s3 + $0x110] sm:$0xff] %vm1651_vm2, %v1557_v27  ;;  %v888_v35 = vadd.f32 %v2521_v8, %v887_v31  ;;  %v1144_v36 = vadd.f32 %v2521_v8, %v1143_v32 }
 0x139   :  { %1750 = vst.msk [vmem:[%s3171_s3 + $0x310] sm:$0xff] %vm1651_vm2, %v1621_v28  ;;  %v1555_v33 = vsel %vm1299_vm9, %v885_v19, %v1427_v25  ;;  %v1619_v34 = vsel %vm1363_vm10, %v1141_v20, %v1491_v26  ;;  %v2043_v37 = vpop.f32.mrb[36].mxu0  ;;  %v2107_v38 = vpop.f32.mrb[36].mxu1  ;;  %vm1302_vm11 = vcmp.ge.f32.partialorder %v896_v29, 0.0  ;;  %v1430_v39 = vmul.f32 0.2, %v896_v29 }
 0x13a   :  { %1684 = vst.msk [vmem:[%s3171_s3 + $0x100] sm:$0xff] %vm1651_vm2, %v1555_v33  ;;  %1748 = vst.msk [vmem:[%s3171_s3 + $0x300] sm:$0xff] %vm1651_vm2, %v1619_v34  ;;  %vm1366_vm12 = vcmp.ge.f32.partialorder %v1152_v30, 0.0  ;;  %v1494_v40 = vmul.f32 0.2, %v1152_v30  ;;  %vm1300_vm13 = vcmp.ge.f32.partialorder %v888_v35, 0.0  ;;  %v909_v45 = vadd.f32 %v2043_v37, %v2521_v8 }
 0x13b   :  { %v1428_v41 = vmul.f32 0.2, %v888_v35  ;;  %vm1364_vm14 = vcmp.ge.f32.partialorder %v1144_v36, 0.0  ;;  %v1492_v42 = vmul.f32 0.2, %v1144_v36  ;;  %v1558_v43 = vsel %vm1302_vm11, %v896_v29, %v1430_v39  ;;  %v900_v47 = vpop.f32.mrb[37].mxu0 }
 0x13c   :  { %v1622_v44 = vsel %vm1366_vm12, %v1152_v30, %v1494_v40  ;;  %v1165_v46 = vadd.f32 %v2107_v38, %v2521_v8  ;;  %v1156_v48 = vpop.f32.mrb[37].mxu1  ;;  %1687 = vst.msk [vmem:[%s3171_s3 + $0x118] sm:$0xff] %vm1651_vm2, %v1558_v43  ;;  %v901_v51 = vadd.f32 %v2521_v8, %v900_v47  ;;  %v2044_v53 = vpop.f32.mrb[38].mxu0  ;;  %vm1305_vm15 = vcmp.ge.f32.partialorder %v909_v45, 0.0  ;;  %v2941_v37 = vld [vmem:[%s3170_s2] ss:$0 sm:$0xff] }
 0x13d   :  { %1751 = vst.msk [vmem:[%s3171_s3 + $0x318] sm:$0xff] %vm1651_vm2, %v1622_v44  ;;  %v1556_v49 = vsel %vm1300_vm13, %v888_v35, %v1428_v41  ;;  %v1620_v50 = vsel %vm1364_vm14, %v1144_v36, %v1492_v42  ;;  %v1157_v52 = vadd.f32 %v2521_v8, %v1156_v48  ;;  %v2108_v54 = vpop.f32.mrb[38].mxu1  ;;  %v1433_v55 = vmul.f32 0.2, %v909_v45  ;;  %v903_v63 = vpop.f32.mrb[39].mxu0 }
 0x13e   :  { %1685 = vst.msk [vmem:[%s3171_s3 + $0x108] sm:$0xff] %vm1651_vm2, %v1556_v49  ;;  %1749 = vst.msk [vmem:[%s3171_s3 + $0x308] sm:$0xff] %vm1651_vm2, %v1620_v50  ;;  %vm1369_vm0 = vcmp.ge.f32.partialorder %v1165_v46, 0.0  ;;  %v1497_v56 = vmul.f32 0.2, %v1165_v46  ;;  %vm1303_vm1 = vcmp.ge.f32.partialorder %v901_v51, 0.0  ;;  %v912_v61 = vadd.f32 %v2044_v53, %v2521_v8 }
 0x13f   :  { %v1431_v57 = vmul.f32 0.2, %v901_v51  ;;  %vm1367_vm3 = vcmp.ge.f32.partialorder %v1157_v52, 0.0  ;;  %v1495_v58 = vmul.f32 0.2, %v1157_v52  ;;  %v1561_v59 = vsel %vm1305_vm15, %v909_v45, %v1433_v55  ;;  %v1159_v0 = vpop.f32.mrb[39].mxu1 }
 0x140   :  { %v1625_v60 = vsel %vm1369_vm0, %v1165_v46, %v1497_v56  ;;  %v1168_v62 = vadd.f32 %v2108_v54, %v2521_v8  ;;  %1690 = vst.msk [vmem:[%s3171_s3 + $0x130] sm:$0xff] %vm1651_vm2, %v1561_v59  ;;  %v904_v3 = vadd.f32 %v2521_v8, %v903_v63  ;;  %v1160_v4 = vadd.f32 %v2521_v8, %v1159_v0 }
 0x141   :  { %1754 = vst.msk [vmem:[%s3171_s3 + $0x330] sm:$0xff] %vm1651_vm2, %v1625_v60  ;;  %v1559_v1 = vsel %vm1303_vm1, %v901_v51, %v1431_v57  ;;  %v1623_v2 = vsel %vm1367_vm3, %v1157_v52, %v1495_v58  ;;  %v2047_v5 = vpop.f32.mrb[40].mxu0  ;;  %v2111_v6 = vpop.f32.mrb[40].mxu1  ;;  %vm1306_vm4 = vcmp.ge.f32.partialorder %v912_v61, 0.0  ;;  %v1434_v7 = vmul.f32 0.2, %v912_v61 }
 0x142   :  { %1688 = vst.msk [vmem:[%s3171_s3 + $0x120] sm:$0xff] %vm1651_vm2, %v1559_v1  ;;  %1752 = vst.msk [vmem:[%s3171_s3 + $0x320] sm:$0xff] %vm1651_vm2, %v1623_v2  ;;  %vm1370_vm5 = vcmp.ge.f32.partialorder %v1168_v62, 0.0  ;;  %v1498_v9 = vmul.f32 0.2, %v1168_v62  ;;  %vm1304_vm6 = vcmp.ge.f32.partialorder %v904_v3, 0.0  ;;  %v925_v14 = vadd.f32 %v2047_v5, %v2521_v8 }
 0x143   :  { %v1432_v10 = vmul.f32 0.2, %v904_v3  ;;  %vm1368_vm7 = vcmp.ge.f32.partialorder %v1160_v4, 0.0  ;;  %v1496_v11 = vmul.f32 0.2, %v1160_v4  ;;  %v1562_v12 = vsel %vm1306_vm4, %v912_v61, %v1434_v7  ;;  %v916_v16 = vpop.f32.mrb[41].mxu0 }
 0x144   :  { %v1626_v13 = vsel %vm1370_vm5, %v1168_v62, %v1498_v9  ;;  %v1181_v15 = vadd.f32 %v2111_v6, %v2521_v8  ;;  %v1172_v17 = vpop.f32.mrb[41].mxu1  ;;  %1691 = vst.msk [vmem:[%s3171_s3 + $0x138] sm:$0xff] %vm1651_vm2, %v1562_v12  ;;  %v917_v20 = vadd.f32 %v2521_v8, %v916_v16  ;;  %v2048_v22 = vpop.f32.mrb[42].mxu0  ;;  %vm1309_vm8 = vcmp.ge.f32.partialorder %v925_v14, 0.0 }
 0x145   :  { %1755 = vst.msk [vmem:[%s3171_s3 + $0x338] sm:$0xff] %vm1651_vm2, %v1626_v13  ;;  %v1560_v18 = vsel %vm1304_vm6, %v904_v3, %v1432_v10  ;;  %v1624_v19 = vsel %vm1368_vm7, %v1160_v4, %v1496_v11  ;;  %v1173_v21 = vadd.f32 %v2521_v8, %v1172_v17  ;;  %v2112_v23 = vpop.f32.mrb[42].mxu1  ;;  %v1437_v24 = vmul.f32 0.2, %v925_v14  ;;  %v919_v32 = vpop.f32.mrb[43].mxu0 }
 0x146   :  { %1689 = vst.msk [vmem:[%s3171_s3 + $0x128] sm:$0xff] %vm1651_vm2, %v1560_v18  ;;  %1753 = vst.msk [vmem:[%s3171_s3 + $0x328] sm:$0xff] %vm1651_vm2, %v1624_v19  ;;  %vm1373_vm9 = vcmp.ge.f32.partialorder %v1181_v15, 0.0  ;;  %v1501_v25 = vmul.f32 0.2, %v1181_v15  ;;  %vm1307_vm10 = vcmp.ge.f32.partialorder %v917_v20, 0.0  ;;  %v928_v30 = vadd.f32 %v2048_v22, %v2521_v8 }
 0x147   :  { %v1435_v26 = vmul.f32 0.2, %v917_v20  ;;  %vm1371_vm11 = vcmp.ge.f32.partialorder %v1173_v21, 0.0  ;;  %v1499_v27 = vmul.f32 0.2, %v1173_v21  ;;  %v1565_v28 = vsel %vm1309_vm8, %v925_v14, %v1437_v24  ;;  %v1175_v33 = vpop.f32.mrb[43].mxu1 }
 0x148   :  { %v1629_v29 = vsel %vm1373_vm9, %v1181_v15, %v1501_v25  ;;  %v1184_v31 = vadd.f32 %v2112_v23, %v2521_v8  ;;  %1694 = vst.msk [vmem:[%s3171_s3 + $0x150] sm:$0xff] %vm1651_vm2, %v1565_v28  ;;  %v920_v36 = vadd.f32 %v2521_v8, %v919_v32  ;;  %v1176_v38 = vadd.f32 %v2941_v37, %v1175_v33 }
 0x149   :  { %1758 = vst.msk [vmem:[%s3171_s3 + $0x350] sm:$0xff] %vm1651_vm2, %v1629_v29  ;;  %v1563_v34 = vsel %vm1307_vm10, %v917_v20, %v1435_v26  ;;  %v1627_v35 = vsel %vm1371_vm11, %v1173_v21, %v1499_v27  ;;  %v2051_v39 = vpop.f32.mrb[44].mxu0  ;;  %v2115_v40 = vpop.f32.mrb[44].mxu1  ;;  %vm1310_vm12 = vcmp.ge.f32.partialorder %v928_v30, 0.0  ;;  %v1438_v8 = vmul.f32 0.2, %v928_v30 }
 0x14a   :  { %1692 = vst.msk [vmem:[%s3171_s3 + $0x140] sm:$0xff] %vm1651_vm2, %v1563_v34  ;;  %1756 = vst.msk [vmem:[%s3171_s3 + $0x340] sm:$0xff] %vm1651_vm2, %v1627_v35  ;;  %vm1374_vm13 = vcmp.ge.f32.partialorder %v1184_v31, 0.0  ;;  %v1502_v41 = vmul.f32 0.2, %v1184_v31  ;;  %vm1308_vm14 = vcmp.ge.f32.partialorder %v920_v36, 0.0  ;;  %v941_v46 = vadd.f32 %v2941_v37, %v2051_v39 }
 0x14b   :  { %v1436_v42 = vmul.f32 0.2, %v920_v36  ;;  %vm1372_vm15 = vcmp.ge.f32.partialorder %v1176_v38, 0.0  ;;  %v1500_v43 = vmul.f32 0.2, %v1176_v38  ;;  %v1566_v44 = vsel %vm1310_vm12, %v928_v30, %v1438_v8  ;;  %v932_v48 = vpop.f32.mrb[45].mxu0 }
 0x14c   :  { %v1630_v45 = vsel %vm1374_vm13, %v1184_v31, %v1502_v41  ;;  %v1197_v47 = vadd.f32 %v2941_v37, %v2115_v40  ;;  %v1188_v49 = vpop.f32.mrb[45].mxu1  ;;  %1695 = vst.msk [vmem:[%s3171_s3 + $0x158] sm:$0xff] %vm1651_vm2, %v1566_v44  ;;  %v933_v52 = vadd.f32 %v2941_v37, %v932_v48  ;;  %v2052_v54 = vpop.f32.mrb[46].mxu0  ;;  %vm1313_vm0 = vcmp.ge.f32.partialorder %v941_v46, 0.0 }
 0x14d   :  { %1759 = vst.msk [vmem:[%s3171_s3 + $0x358] sm:$0xff] %vm1651_vm2, %v1630_v45  ;;  %v1564_v50 = vsel %vm1308_vm14, %v920_v36, %v1436_v42  ;;  %v1628_v51 = vsel %vm1372_vm15, %v1176_v38, %v1500_v43  ;;  %v1189_v53 = vadd.f32 %v2941_v37, %v1188_v49  ;;  %v2116_v55 = vpop.f32.mrb[46].mxu1  ;;  %v1441_v56 = vmul.f32 0.2, %v941_v46  ;;  %v935_v0 = vpop.f32.mrb[47].mxu0 }
 0x14e   :  { %1693 = vst.msk [vmem:[%s3171_s3 + $0x148] sm:$0xff] %vm1651_vm2, %v1564_v50  ;;  %1757 = vst.msk [vmem:[%s3171_s3 + $0x348] sm:$0xff] %vm1651_vm2, %v1628_v51  ;;  %vm1377_vm1 = vcmp.ge.f32.partialorder %v1197_v47, 0.0  ;;  %v1505_v57 = vmul.f32 0.2, %v1197_v47  ;;  %vm1311_vm3 = vcmp.ge.f32.partialorder %v933_v52, 0.0  ;;  %v944_v62 = vadd.f32 %v2941_v37, %v2052_v54 }
 0x14f   :  { %v1439_v58 = vmul.f32 0.2, %v933_v52  ;;  %vm1375_vm4 = vcmp.ge.f32.partialorder %v1189_v53, 0.0  ;;  %v1503_v59 = vmul.f32 0.2, %v1189_v53  ;;  %v1569_v60 = vsel %vm1313_vm0, %v941_v46, %v1441_v56  ;;  %v1191_v1 = vpop.f32.mrb[47].mxu1 }
 0x150   :  { %v1633_v61 = vsel %vm1377_vm1, %v1197_v47, %v1505_v57  ;;  %v1200_v63 = vadd.f32 %v2941_v37, %v2116_v55  ;;  %1698 = vst.msk [vmem:[%s3171_s3 + $0x170] sm:$0xff] %vm1651_vm2, %v1569_v60  ;;  %v936_v4 = vadd.f32 %v2941_v37, %v935_v0  ;;  %v1192_v5 = vadd.f32 %v2941_v37, %v1191_v1 }
 0x151   :  { %1762 = vst.msk [vmem:[%s3171_s3 + $0x370] sm:$0xff] %vm1651_vm2, %v1633_v61  ;;  %v1567_v2 = vsel %vm1311_vm3, %v933_v52, %v1439_v58  ;;  %v1631_v3 = vsel %vm1375_vm4, %v1189_v53, %v1503_v59  ;;  %v2055_v6 = vpop.f32.mrb[48].mxu0  ;;  %v2119_v7 = vpop.f32.mrb[48].mxu1  ;;  %vm1314_vm5 = vcmp.ge.f32.partialorder %v944_v62, 0.0  ;;  %v1442_v9 = vmul.f32 0.2, %v944_v62 }
 0x152   :  { %1696 = vst.msk [vmem:[%s3171_s3 + $0x160] sm:$0xff] %vm1651_vm2, %v1567_v2  ;;  %1760 = vst.msk [vmem:[%s3171_s3 + $0x360] sm:$0xff] %vm1651_vm2, %v1631_v3  ;;  %vm1378_vm6 = vcmp.ge.f32.partialorder %v1200_v63, 0.0  ;;  %v1506_v10 = vmul.f32 0.2, %v1200_v63  ;;  %vm1312_vm7 = vcmp.ge.f32.partialorder %v936_v4, 0.0  ;;  %v957_v15 = vadd.f32 %v2941_v37, %v2055_v6 }
 0x153   :  { %v1440_v11 = vmul.f32 0.2, %v936_v4  ;;  %vm1376_vm8 = vcmp.ge.f32.partialorder %v1192_v5, 0.0  ;;  %v1504_v12 = vmul.f32 0.2, %v1192_v5  ;;  %v1570_v13 = vsel %vm1314_vm5, %v944_v62, %v1442_v9  ;;  %v948_v17 = vpop.f32.mrb[49].mxu0 }
 0x154   :  { %v1634_v14 = vsel %vm1378_vm6, %v1200_v63, %v1506_v10  ;;  %v1213_v16 = vadd.f32 %v2941_v37, %v2119_v7  ;;  %v1204_v18 = vpop.f32.mrb[49].mxu1  ;;  %1699 = vst.msk [vmem:[%s3171_s3 + $0x178] sm:$0xff] %vm1651_vm2, %v1570_v13  ;;  %v949_v21 = vadd.f32 %v2941_v37, %v948_v17  ;;  %v2056_v23 = vpop.f32.mrb[50].mxu0  ;;  %vm1317_vm9 = vcmp.ge.f32.partialorder %v957_v15, 0.0 }
 0x155   :  { %1763 = vst.msk [vmem:[%s3171_s3 + $0x378] sm:$0xff] %vm1651_vm2, %v1634_v14  ;;  %v1568_v19 = vsel %vm1312_vm7, %v936_v4, %v1440_v11  ;;  %v1632_v20 = vsel %vm1376_vm8, %v1192_v5, %v1504_v12  ;;  %v1205_v22 = vadd.f32 %v2941_v37, %v1204_v18  ;;  %v2120_v24 = vpop.f32.mrb[50].mxu1  ;;  %v1445_v25 = vmul.f32 0.2, %v957_v15  ;;  %v951_v33 = vpop.f32.mrb[51].mxu0 }
 0x156   :  { %1697 = vst.msk [vmem:[%s3171_s3 + $0x168] sm:$0xff] %vm1651_vm2, %v1568_v19  ;;  %1761 = vst.msk [vmem:[%s3171_s3 + $0x368] sm:$0xff] %vm1651_vm2, %v1632_v20  ;;  %vm1381_vm10 = vcmp.ge.f32.partialorder %v1213_v16, 0.0  ;;  %v1509_v26 = vmul.f32 0.2, %v1213_v16  ;;  %vm1315_vm11 = vcmp.ge.f32.partialorder %v949_v21, 0.0  ;;  %v960_v31 = vadd.f32 %v2941_v37, %v2056_v23 }
 0x157   :  { %v1443_v27 = vmul.f32 0.2, %v949_v21  ;;  %vm1379_vm12 = vcmp.ge.f32.partialorder %v1205_v22, 0.0  ;;  %v1507_v28 = vmul.f32 0.2, %v1205_v22  ;;  %v1573_v29 = vsel %vm1317_vm9, %v957_v15, %v1445_v25  ;;  %v1207_v34 = vpop.f32.mrb[51].mxu1 }
 0x158   :  { %v1637_v30 = vsel %vm1381_vm10, %v1213_v16, %v1509_v26  ;;  %v1216_v32 = vadd.f32 %v2941_v37, %v2120_v24  ;;  %1702 = vst.msk [vmem:[%s3171_s3 + $0x190] sm:$0xff] %vm1651_vm2, %v1573_v29  ;;  %v952_v38 = vadd.f32 %v2941_v37, %v951_v33  ;;  %v1208_v39 = vadd.f32 %v2941_v37, %v1207_v34 }
 0x159   :  { %1766 = vst.msk [vmem:[%s3171_s3 + $0x390] sm:$0xff] %vm1651_vm2, %v1637_v30  ;;  %v1571_v35 = vsel %vm1315_vm11, %v949_v21, %v1443_v27  ;;  %v1635_v36 = vsel %vm1379_vm12, %v1205_v22, %v1507_v28  ;;  %v2059_v40 = vpop.f32.mrb[52].mxu0  ;;  %v2123_v8 = vpop.f32.mrb[52].mxu1  ;;  %vm1318_vm13 = vcmp.ge.f32.partialorder %v960_v31, 0.0  ;;  %v1446_v41 = vmul.f32 0.2, %v960_v31 }
 0x15a   :  { %1700 = vst.msk [vmem:[%s3171_s3 + $0x180] sm:$0xff] %vm1651_vm2, %v1571_v35  ;;  %1764 = vst.msk [vmem:[%s3171_s3 + $0x380] sm:$0xff] %vm1651_vm2, %v1635_v36  ;;  %vm1382_vm14 = vcmp.ge.f32.partialorder %v1216_v32, 0.0  ;;  %v1510_v42 = vmul.f32 0.2, %v1216_v32  ;;  %vm1316_vm15 = vcmp.ge.f32.partialorder %v952_v38, 0.0  ;;  %v973_v47 = vadd.f32 %v2941_v37, %v2059_v40 }
 0x15b   :  { %v1444_v43 = vmul.f32 0.2, %v952_v38  ;;  %vm1380_vm0 = vcmp.ge.f32.partialorder %v1208_v39, 0.0  ;;  %v1508_v44 = vmul.f32 0.2, %v1208_v39  ;;  %v1574_v45 = vsel %vm1318_vm13, %v960_v31, %v1446_v41  ;;  %v964_v49 = vpop.f32.mrb[53].mxu0 }
 0x15c   :  { %v1638_v46 = vsel %vm1382_vm14, %v1216_v32, %v1510_v42  ;;  %v1229_v48 = vadd.f32 %v2941_v37, %v2123_v8  ;;  %v1220_v50 = vpop.f32.mrb[53].mxu1  ;;  %1703 = vst.msk [vmem:[%s3171_s3 + $0x198] sm:$0xff] %vm1651_vm2, %v1574_v45  ;;  %v965_v53 = vadd.f32 %v2941_v37, %v964_v49  ;;  %v2060_v55 = vpop.f32.mrb[54].mxu0  ;;  %vm1321_vm1 = vcmp.ge.f32.partialorder %v973_v47, 0.0 }
 0x15d   :  { %1767 = vst.msk [vmem:[%s3171_s3 + $0x398] sm:$0xff] %vm1651_vm2, %v1638_v46  ;;  %v1572_v51 = vsel %vm1316_vm15, %v952_v38, %v1444_v43  ;;  %v1636_v52 = vsel %vm1380_vm0, %v1208_v39, %v1508_v44  ;;  %v1221_v54 = vadd.f32 %v2941_v37, %v1220_v50  ;;  %v2124_v56 = vpop.f32.mrb[54].mxu1  ;;  %v1449_v57 = vmul.f32 0.2, %v973_v47  ;;  %v967_v1 = vpop.f32.mrb[55].mxu0 }
 0x15e   :  { %1701 = vst.msk [vmem:[%s3171_s3 + $0x188] sm:$0xff] %vm1651_vm2, %v1572_v51  ;;  %1765 = vst.msk [vmem:[%s3171_s3 + $0x388] sm:$0xff] %vm1651_vm2, %v1636_v52  ;;  %vm1385_vm3 = vcmp.ge.f32.partialorder %v1229_v48, 0.0  ;;  %v1513_v58 = vmul.f32 0.2, %v1229_v48  ;;  %vm1319_vm4 = vcmp.ge.f32.partialorder %v965_v53, 0.0  ;;  %v976_v63 = vadd.f32 %v2941_v37, %v2060_v55 }
 0x15f   :  { %v1447_v59 = vmul.f32 0.2, %v965_v53  ;;  %vm1383_vm5 = vcmp.ge.f32.partialorder %v1221_v54, 0.0  ;;  %v1511_v60 = vmul.f32 0.2, %v1221_v54  ;;  %v1577_v61 = vsel %vm1321_vm1, %v973_v47, %v1449_v57  ;;  %v1223_v2 = vpop.f32.mrb[55].mxu1 }
 0x160   :  { %v1641_v62 = vsel %vm1385_vm3, %v1229_v48, %v1513_v58  ;;  %v1232_v0 = vadd.f32 %v2941_v37, %v2124_v56  ;;  %1706 = vst.msk [vmem:[%s3171_s3 + $0x1b0] sm:$0xff] %vm1651_vm2, %v1577_v61  ;;  %v968_v5 = vadd.f32 %v2941_v37, %v967_v1  ;;  %v1224_v6 = vadd.f32 %v2941_v37, %v1223_v2 }
 0x161   :  { %1770 = vst.msk [vmem:[%s3171_s3 + $0x3b0] sm:$0xff] %vm1651_vm2, %v1641_v62  ;;  %v1575_v3 = vsel %vm1319_vm4, %v965_v53, %v1447_v59  ;;  %v1639_v4 = vsel %vm1383_vm5, %v1221_v54, %v1511_v60  ;;  %v2063_v7 = vpop.f32.mrb[56].mxu0  ;;  %v2127_v9 = vpop.f32.mrb[56].mxu1  ;;  %vm1322_vm6 = vcmp.ge.f32.partialorder %v976_v63, 0.0  ;;  %v1450_v10 = vmul.f32 0.2, %v976_v63 }
 0x162   :  { %1704 = vst.msk [vmem:[%s3171_s3 + $0x1a0] sm:$0xff] %vm1651_vm2, %v1575_v3  ;;  %1768 = vst.msk [vmem:[%s3171_s3 + $0x3a0] sm:$0xff] %vm1651_vm2, %v1639_v4  ;;  %vm1386_vm7 = vcmp.ge.f32.partialorder %v1232_v0, 0.0  ;;  %v1514_v11 = vmul.f32 0.2, %v1232_v0  ;;  %vm1320_vm8 = vcmp.ge.f32.partialorder %v968_v5, 0.0  ;;  %v989_v16 = vadd.f32 %v2941_v37, %v2063_v7 }
 0x163   :  { %v1448_v12 = vmul.f32 0.2, %v968_v5  ;;  %vm1384_vm9 = vcmp.ge.f32.partialorder %v1224_v6, 0.0  ;;  %v1512_v13 = vmul.f32 0.2, %v1224_v6  ;;  %v1578_v14 = vsel %vm1322_vm6, %v976_v63, %v1450_v10  ;;  %v980_v18 = vpop.f32.mrb[57].mxu0 }
 0x164   :  { %v1642_v15 = vsel %vm1386_vm7, %v1232_v0, %v1514_v11  ;;  %v1245_v17 = vadd.f32 %v2941_v37, %v2127_v9  ;;  %v1236_v19 = vpop.f32.mrb[57].mxu1  ;;  %1707 = vst.msk [vmem:[%s3171_s3 + $0x1b8] sm:$0xff] %vm1651_vm2, %v1578_v14  ;;  %v981_v22 = vadd.f32 %v2941_v37, %v980_v18  ;;  %v2064_v24 = vpop.f32.mrb[58].mxu0  ;;  %vm1325_vm10 = vcmp.ge.f32.partialorder %v989_v16, 0.0 }
 0x165   :  { %1771 = vst.msk [vmem:[%s3171_s3 + $0x3b8] sm:$0xff] %vm1651_vm2, %v1642_v15  ;;  %v1576_v20 = vsel %vm1320_vm8, %v968_v5, %v1448_v12  ;;  %v1640_v21 = vsel %vm1384_vm9, %v1224_v6, %v1512_v13  ;;  %v1237_v23 = vadd.f32 %v2941_v37, %v1236_v19  ;;  %v2128_v25 = vpop.f32.mrb[58].mxu1  ;;  %v1453_v26 = vmul.f32 0.2, %v989_v16  ;;  %v983_v34 = vpop.f32.mrb[59].mxu0 }
 0x166   :  { %1705 = vst.msk [vmem:[%s3171_s3 + $0x1a8] sm:$0xff] %vm1651_vm2, %v1576_v20  ;;  %1769 = vst.msk [vmem:[%s3171_s3 + $0x3a8] sm:$0xff] %vm1651_vm2, %v1640_v21  ;;  %vm1389_vm11 = vcmp.ge.f32.partialorder %v1245_v17, 0.0  ;;  %v1517_v27 = vmul.f32 0.2, %v1245_v17  ;;  %vm1323_vm12 = vcmp.ge.f32.partialorder %v981_v22, 0.0  ;;  %v992_v32 = vadd.f32 %v2941_v37, %v2064_v24 }
 0x167   :  { %v1451_v28 = vmul.f32 0.2, %v981_v22  ;;  %vm1387_vm13 = vcmp.ge.f32.partialorder %v1237_v23, 0.0  ;;  %v1515_v29 = vmul.f32 0.2, %v1237_v23  ;;  %v1581_v30 = vsel %vm1325_vm10, %v989_v16, %v1453_v26  ;;  %v1239_v35 = vpop.f32.mrb[59].mxu1 }
 0x168   :  { %v1645_v31 = vsel %vm1389_vm11, %v1245_v17, %v1517_v27  ;;  %v1248_v33 = vadd.f32 %v2941_v37, %v2128_v25  ;;  %1710 = vst.msk [vmem:[%s3171_s3 + $0x1d0] sm:$0xff] %vm1651_vm2, %v1581_v30  ;;  %v984_v39 = vadd.f32 %v2941_v37, %v983_v34  ;;  %v1240_v40 = vadd.f32 %v2941_v37, %v1239_v35 }
 0x169   :  { %1774 = vst.msk [vmem:[%s3171_s3 + $0x3d0] sm:$0xff] %vm1651_vm2, %v1645_v31  ;;  %v1579_v36 = vsel %vm1323_vm12, %v981_v22, %v1451_v28  ;;  %v1643_v38 = vsel %vm1387_vm13, %v1237_v23, %v1515_v29  ;;  %v2067_v8 = vpop.f32.mrb[60].mxu0  ;;  %v2131_v41 = vpop.f32.mrb[60].mxu1  ;;  %vm1326_vm14 = vcmp.ge.f32.partialorder %v992_v32, 0.0  ;;  %v1454_v42 = vmul.f32 0.2, %v992_v32 }
 0x16a   :  { %1708 = vst.msk [vmem:[%s3171_s3 + $0x1c0] sm:$0xff] %vm1651_vm2, %v1579_v36  ;;  %1772 = vst.msk [vmem:[%s3171_s3 + $0x3c0] sm:$0xff] %vm1651_vm2, %v1643_v38  ;;  %vm1390_vm15 = vcmp.ge.f32.partialorder %v1248_v33, 0.0  ;;  %v1518_v43 = vmul.f32 0.2, %v1248_v33  ;;  %vm1324_vm0 = vcmp.ge.f32.partialorder %v984_v39, 0.0  ;;  %v1005_v48 = vadd.f32 %v2941_v37, %v2067_v8 }
 0x16b   :  { %v1452_v44 = vmul.f32 0.2, %v984_v39  ;;  %vm1388_vm1 = vcmp.ge.f32.partialorder %v1240_v40, 0.0  ;;  %v1516_v45 = vmul.f32 0.2, %v1240_v40  ;;  %v1582_v46 = vsel %vm1326_vm14, %v992_v32, %v1454_v42  ;;  %v996_v50 = vpop.f32.mrb[61].mxu0 }
 0x16c   :  { %v1646_v47 = vsel %vm1390_vm15, %v1248_v33, %v1518_v43  ;;  %v1261_v49 = vadd.f32 %v2941_v37, %v2131_v41  ;;  %v1252_v51 = vpop.f32.mrb[61].mxu1  ;;  %1711 = vst.msk [vmem:[%s3171_s3 + $0x1d8] sm:$0xff] %vm1651_vm2, %v1582_v46  ;;  %v997_v54 = vadd.f32 %v2941_v37, %v996_v50  ;;  %v2068_v56 = vpop.f32.mrb[62].mxu0  ;;  %vm1329_vm3 = vcmp.ge.f32.partialorder %v1005_v48, 0.0 }
 0x16d   :  { %1775 = vst.msk [vmem:[%s3171_s3 + $0x3d8] sm:$0xff] %vm1651_vm2, %v1646_v47  ;;  %v1580_v52 = vsel %vm1324_vm0, %v984_v39, %v1452_v44  ;;  %v1644_v53 = vsel %vm1388_vm1, %v1240_v40, %v1516_v45  ;;  %v1253_v55 = vadd.f32 %v2941_v37, %v1252_v51  ;;  %v2132_v57 = vpop.f32.mrb[62].mxu1  ;;  %v1457_v58 = vmul.f32 0.2, %v1005_v48  ;;  %v999_v2 = vpop.f32.mrb[63].mxu0 }
 0x16e   :  { %1709 = vst.msk [vmem:[%s3171_s3 + $0x1c8] sm:$0xff] %vm1651_vm2, %v1580_v52  ;;  %1773 = vst.msk [vmem:[%s3171_s3 + $0x3c8] sm:$0xff] %vm1651_vm2, %v1644_v53  ;;  %vm1393_vm4 = vcmp.ge.f32.partialorder %v1261_v49, 0.0  ;;  %v1521_v59 = vmul.f32 0.2, %v1261_v49  ;;  %vm1327_vm5 = vcmp.ge.f32.partialorder %v997_v54, 0.0  ;;  %v1008_v0 = vadd.f32 %v2941_v37, %v2068_v56 }
 0x16f   :  { %v1455_v60 = vmul.f32 0.2, %v997_v54  ;;  %vm1391_vm6 = vcmp.ge.f32.partialorder %v1253_v55, 0.0  ;;  %v1519_v61 = vmul.f32 0.2, %v1253_v55  ;;  %v1585_v62 = vsel %vm1329_vm3, %v1005_v48, %v1457_v58  ;;  %v1255_v3 = vpop.f32.mrb[63].mxu1 }
 0x170   :  { %v1649_v63 = vsel %vm1393_vm4, %v1261_v49, %v1521_v59  ;;  %v1264_v1 = vadd.f32 %v2941_v37, %v2132_v57  ;;  %1714 = vst.msk [vmem:[%s3171_s3 + $0x1f0] sm:$0xff] %vm1651_vm2, %v1585_v62  ;;  %v1000_v6 = vadd.f32 %v2941_v37, %v999_v2  ;;  %v1256_v7 = vadd.f32 %v2941_v37, %v1255_v3 }
 0x171   :  { %1778 = vst.msk [vmem:[%s3171_s3 + $0x3f0] sm:$0xff] %vm1651_vm2, %v1649_v63  ;;  %v1583_v4 = vsel %vm1327_vm5, %v997_v54, %v1455_v60  ;;  %v1647_v5 = vsel %vm1391_vm6, %v1253_v55, %v1519_v61  ;;  %vm1330_vm7 = vcmp.ge.f32.partialorder %v1008_v0, 0.0  ;;  %v1458_v9 = vmul.f32 0.2, %v1008_v0 }
 0x172   :  { %1712 = vst.msk [vmem:[%s3171_s3 + $0x1e0] sm:$0xff] %vm1651_vm2, %v1583_v4  ;;  %1776 = vst.msk [vmem:[%s3171_s3 + $0x3e0] sm:$0xff] %vm1651_vm2, %v1647_v5  ;;  %vm1394_vm8 = vcmp.ge.f32.partialorder %v1264_v1, 0.0  ;;  %v1522_v10 = vmul.f32 0.2, %v1264_v1  ;;  %vm1328_vm9 = vcmp.ge.f32.partialorder %v1000_v6, 0.0 }
 0x173   :  { %v1456_v11 = vmul.f32 0.2, %v1000_v6  ;;  %vm1392_vm10 = vcmp.ge.f32.partialorder %v1256_v7, 0.0  ;;  %v1520_v12 = vmul.f32 0.2, %v1256_v7  ;;  %v1586_v13 = vsel %vm1330_vm7, %v1008_v0, %v1458_v9 }
 0x174   :  { %v1650_v37 = vsel %vm1394_vm8, %v1264_v1, %v1522_v10  ;;  %1715 = vst.msk [vmem:[%s3171_s3 + $0x1f8] sm:$0xff] %vm1651_vm2, %v1586_v13 }
 0x175   :  { %1779 = vst.msk [vmem:[%s3171_s3 + $0x3f8] sm:$0xff] %vm1651_vm2, %v1650_v37  ;;  %v1584_v14 = vsel %vm1328_vm9, %v1000_v6, %v1456_v11  ;;  %v1648_v15 = vsel %vm1392_vm10, %v1256_v7, %v1520_v12 }
 0x176   :  { %1713 = vst.msk [vmem:[%s3171_s3 + $0x1e8] sm:$0xff] %vm1651_vm2, %v1584_v14  ;;  %1777 = vst.msk [vmem:[%s3171_s3 + $0x3e8] sm:$0xff] %vm1651_vm2, %v1648_v15 }

</bundles_post_ra>
